<compile_context>
chip_gen: v5e
topology: v5e:2x2
jax: 0.10.0
libtpu: 0.0.40
codegen_flags: <defaults>
</compile_context>

<pallas_src>
import functools

import numpy as np
import jax
import jax.numpy as jnp
from jax.experimental import pallas as pl
from jax.experimental.pallas import tpu as pltpu


# ----------------------------------------------------------------------------
# Tree utilities (host-side glue; mirrors the PyTorch recursion order exactly)
# ----------------------------------------------------------------------------
class Node:
    def __init__(self, index):
        self.index = index
        self.children = []
        self.parent = None
        self.is_root = False

    def add_child(self, child):
        child.parent = self
        self.children.append(child)
        return child


def _postorder(tree, out):
    for ch in tree.children:
        _postorder(ch, out)
    out.append(tree)


def _preorder(tree, out):
    out.append(tree)
    for ch in tree.children:
        _preorder(ch, out)


def _round_up(x, m):
    return ((x + m - 1) // m) * m


def _next_pow2(x):
    return 1 if x <= 1 else 1 << (int(x) - 1).bit_length()


def _levels_forward(forest):
    """Group nodes by leaf-height: level(n) = 0 if leaf else 1+max(children)."""
    level_of = {}
    order = []

    def post(n):
        for ch in n.children:
            post(ch)
        lv = 0 if not n.children else 1 + max(level_of[id(ch)] for ch in n.children)
        level_of[id(n)] = lv
        order.append(n)

    for t in forest:
        post(t)
    n_levels = 1 + max(level_of.values())
    levels = [[] for _ in range(n_levels)]
    for n in order:
        levels[level_of[id(n)]].append(n)
    return levels


def _levels_backward(forest):
    """Group nodes by depth from the forest roots (root depth = 0)."""
    depth_of = {}
    order = []

    def pre(n, d):
        depth_of[id(n)] = d
        order.append(n)
        for ch in n.children:
            pre(ch, d + 1)

    for t in forest:
        pre(t, 0)
    n_levels = 1 + max(depth_of.values())
    levels = [[] for _ in range(n_levels)]
    for n in order:
        levels[depth_of[id(n)]].append(n)
    return levels


# ----------------------------------------------------------------------------
# Pallas kernels — one fused kernel per direction, no grid.
# ----------------------------------------------------------------------------
def _fwd_tree_kernel(feats_ref, wcat_ref, bcat_ref,
                     sel_ref, csel_ref, scat_ref,
                     iohw_ref, fhw_ref,
                     out_ref,
                     *, h_dim, n_levels, max_children, lpad, unroll):
    """Child-sum TreeLSTM (TreeLSTM_Forward), all levels in one invocation."""
    H = h_dim
    npad = out_ref.shape[0]

    # Fused x-projection pre-pass: (Npad,F) @ (F,6H) + bias.
    # Layout: [px | ioffu_x (+ both biases) | forget_x (+ both biases)]
    proj = jnp.dot(feats_ref[...], wcat_ref[...],
                   preferred_element_type=jnp.float32) + bcat_ref[...]

    iohw = iohw_ref[...]          # (H, 4H)
    fhw = fhw_ref[...]            # (H, H)

    hc0 = jnp.zeros((npad, 2 * H), jnp.float32)   # fused [h_final | c] table

    def level_step(l, hc):
        S = sel_ref[l]            # (Lpad, Npad)   level node selection
        CS = csel_ref[l]          # (max_c*Lpad, Npad) flattened child selection
        T = scat_ref[l]           # (Npad, Lpad)   scatter back to node rows

        # Gather all x-projections for this level in one matmul.
        P = jnp.dot(S, proj, preferred_element_type=jnp.float32)     # (Lpad, 6H)
        px = P[:, 0 * H:1 * H]
        xio = P[:, 1 * H:5 * H]
        fx = P[:, 5 * H:6 * H]

        # Batched child gather: one matmul for all child slots, h and c fused.
        CHC = jnp.dot(CS, hc, preferred_element_type=jnp.float32)    # (mc*Lpad, 2H)
        CH = CHC[:, :H]
        CC = CHC[:, H:]

        # One forget matmul + one sigmoid over the whole child batch.
        f_all = jax.nn.sigmoid(
            jnp.tile(fx, (max_children, 1)) +
            jnp.dot(CH, fhw, preferred_element_type=jnp.float32))    # (mc*Lpad, H)
        fc_sum = (f_all * CC).reshape(max_children, lpad, H).sum(axis=0)
        h_sum = CH.reshape(max_children, lpad, H).sum(axis=0)        # (Lpad, H)

        ioffu = xio + jnp.dot(h_sum, iohw, preferred_element_type=jnp.float32)
        i = jax.nn.sigmoid(ioffu[:, 0 * H:1 * H])
        o = jax.nn.sigmoid(ioffu[:, 1 * H:2 * H])
        u = jnp.tanh(ioffu[:, 2 * H:3 * H])
        r = jax.nn.sigmoid(ioffu[:, 3 * H:4 * H])

        c = i * u + fc_sum
        h = o * jnp.tanh(c)
        h_final = r * h + (1.0 - r) * px

        upd = jnp.concatenate([h_final, c], axis=1)                  # (Lpad, 2H)
        # Scatter-add (padded level rows have zero scatter columns -> no effect).
        return hc + jnp.dot(T, upd, preferred_element_type=jnp.float32)

    hc = jax.lax.fori_loop(0, n_levels, level_step, hc0, unroll=unroll)
    out_ref[...] = hc[:, :H]


def _bwd_tree_kernel(feats_ref, wcat_ref, bcat_ref,
                     sel_ref, psel_ref, scat_ref,
                     iohw_ref,
                     out_ref,
                     *, h_dim, n_levels, unroll):
    """TreeLSTM_Backward (root -> leaves), all levels in one invocation."""
    H = h_dim
    npad = out_ref.shape[0]

    # Layout: [px | iofu_x (+ both biases)]  -> (Npad, 6H)
    proj = jnp.dot(feats_ref[...], wcat_ref[...],
                   preferred_element_type=jnp.float32) + bcat_ref[...]
    iohw = iohw_ref[...]          # (H, 5H)

    hc0 = jnp.zeros((npad, 2 * H), jnp.float32)

    def level_step(l, hc):
        S = sel_ref[l]            # (Lpad, Npad)
        P_sel = psel_ref[l]       # (Lpad, Npad) parent selection (zero row => zeros)
        T = scat_ref[l]           # (Npad, Lpad)

        P = jnp.dot(S, proj, preferred_element_type=jnp.float32)     # (Lpad, 6H)
        px = P[:, 0 * H:1 * H]
        xio = P[:, 1 * H:6 * H]

        PHC = jnp.dot(P_sel, hc, preferred_element_type=jnp.float32)  # (Lpad, 2H)
        root_h = PHC[:, :H]
        root_c = PHC[:, H:]

        iofu = xio + jnp.dot(root_h, iohw, preferred_element_type=jnp.float32)
        i = jax.nn.sigmoid(iofu[:, 0 * H:1 * H])
        o = jax.nn.sigmoid(iofu[:, 1 * H:2 * H])
        f = jax.nn.sigmoid(iofu[:, 2 * H:3 * H])
        u = jnp.tanh(iofu[:, 3 * H:4 * H])
        r = jax.nn.sigmoid(iofu[:, 4 * H:5 * H])

        c = i * u + f * root_c
        h = o * jnp.tanh(c)
        h_final = r * h + (1.0 - r) * px

        upd = jnp.concatenate([h_final, c], axis=1)
        return hc + jnp.dot(T, upd, preferred_element_type=jnp.float32)

    hc = jax.lax.fori_loop(0, n_levels, level_step, hc0, unroll=unroll)
    out_ref[...] = hc[:, :H]


# ----------------------------------------------------------------------------
# Module wrapper
# ----------------------------------------------------------------------------
class OneDirectionalTreeLSTMPallas:
    def __init__(self, in_dim, out_dim, direction, dropout=0.0,
                 pass_root=False, seed=0):
        assert dropout == 0.0
        assert direction in ("forward", "backward")
        self.in_dim = in_dim
        self.out_dim = out_dim
        self.direction = direction
        self.pass_root = pass_root

        H, F = out_dim, in_dim
        key = jax.random.PRNGKey(seed)
        # Weights stored pre-transposed: y = x @ W_t + b, W_t shape (in, out).
        if direction == "forward":
            ks = jax.random.split(key, 5)
            self.params = dict(
                pxw=0.1 * jax.random.normal(ks[0], (F, H), jnp.float32),
                pxb=jnp.zeros((1, H), jnp.float32),
                ioxw=0.1 * jax.random.normal(ks[1], (F, 4 * H), jnp.float32),
                ioxb=jnp.zeros((1, 4 * H), jnp.float32),
                iohw=0.1 * jax.random.normal(ks[2], (H, 4 * H), jnp.float32),
                iohb=jnp.zeros((1, 4 * H), jnp.float32),
                fxw=0.1 * jax.random.normal(ks[3], (F, H), jnp.float32),
                fxb=jnp.zeros((1, H), jnp.float32),
                fhw=0.1 * jax.random.normal(ks[4], (H, H), jnp.float32),
                fhb=jnp.ones((1, H), jnp.float32),   # forget_h.bias = 1.0
            )
            p = self.params
            self.wcat = jnp.concatenate([p["pxw"], p["ioxw"], p["fxw"]], axis=1)
            self.bcat = jnp.concatenate(
                [p["pxb"], p["ioxb"] + p["iohb"], p["fxb"] + p["fhb"]], axis=1)
        else:  # backward
            ks = jax.random.split(key, 3)
            iofuh_b = jnp.zeros((5 * H,), jnp.float32)
            iofuh_b = iofuh_b.at[2 * H:3 * H].set(1.0)           # f-gate bias
            self.params = dict(
                pxw=0.1 * jax.random.normal(ks[0], (F, H), jnp.float32),
                pxb=jnp.zeros((1, H), jnp.float32),
                ioxw=0.1 * jax.random.normal(ks[1], (F, 5 * H), jnp.float32),
                ioxb=jnp.zeros((1, 5 * H), jnp.float32),
                iohw=0.1 * jax.random.normal(ks[2], (H, 5 * H), jnp.float32),
                iohb=iofuh_b.reshape(1, 5 * H),
            )
            p = self.params
            self.wcat = jnp.concatenate([p["pxw"], p["ioxw"]], axis=1)
            self.bcat = jnp.concatenate([p["pxb"], p["ioxb"] + p["iohb"]], axis=1)

    # ---------------- forward pass ----------------
    def __call__(self, forest, features, num_obj):
        H, F = self.out_dim, self.in_dim
        p = self.params
        vmem = pl.BlockSpec(memory_space=pltpu.MemorySpace.VMEM)

        npad = _round_up(max(num_obj, 1), 8)
        feats = jnp.asarray(features, jnp.float32)
        feats_p = jnp.zeros((npad, F), jnp.float32).at[:num_obj].set(feats)

        if self.direction == "forward":
            levels = _levels_forward(forest)
            assert sum(len(lv) for lv in levels) == num_obj
            # Bucketed static shapes -> different forests hit the compile cache;
            # padded levels / slots are zero-selection no-ops.
            n_levels = _round_up(len(levels), 4)
            lpad = _round_up(max(len(lv) for lv in levels), 8)
            max_c = _next_pow2(max(1, max((len(n.children)
                                           for lv in levels for n in lv),
                                          default=1)))

            sel = np.zeros((n_levels, lpad, npad), np.float32)
            csel = np.zeros((n_levels, max_c, lpad, npad), np.float32)
            scat = np.zeros((n_levels, npad, lpad), np.float32)
            for l, lv in enumerate(levels):
                for s, n in enumerate(lv):
                    sel[l, s, n.index] = 1.0
                    scat[l, n.index, s] = 1.0
                    for j, ch in enumerate(n.children):
                        csel[l, j, s, ch.index] = 1.0
            csel = csel.reshape(n_levels, max_c * lpad, npad)

            kernel = functools.partial(
                _fwd_tree_kernel, h_dim=H, n_levels=n_levels,
                max_children=max_c, lpad=lpad, unroll=(n_levels <= 8))
            out = pl.pallas_call(
                kernel,
                out_shape=jax.ShapeDtypeStruct((npad, H), jnp.float32),
                in_specs=[vmem] * 8,
                out_specs=vmem,
            )(feats_p, self.wcat, self.bcat,
              jnp.asarray(sel), jnp.asarray(csel), jnp.asarray(scat),
              p["iohw"], p["fhw"])
            return out[:num_obj]

        else:  # backward
            levels = _levels_backward(forest)
            assert sum(len(lv) for lv in levels) == num_obj
            n_levels = _round_up(len(levels), 4)
            lpad = _round_up(max(len(lv) for lv in levels), 8)

            sel = np.zeros((n_levels, lpad, npad), np.float32)
            psel = np.zeros((n_levels, lpad, npad), np.float32)
            scat = np.zeros((n_levels, npad, lpad), np.float32)
            for l, lv in enumerate(levels):
                for s, n in enumerate(lv):
                    sel[l, s, n.index] = 1.0
                    scat[l, n.index, s] = 1.0
                    use_zero = (n.parent is None
                                or (n.parent.is_root and not self.pass_root))
                    if not use_zero:
                        psel[l, s, n.parent.index] = 1.0

            kernel = functools.partial(
                _bwd_tree_kernel, h_dim=H, n_levels=n_levels,
                unroll=(n_levels <= 8))
            out = pl.pallas_call(
                kernel,
                out_shape=jax.ShapeDtypeStruct((npad, H), jnp.float32),
                in_specs=[vmem] * 7,
                out_specs=vmem,
            )(feats_p, self.wcat, self.bcat,
              jnp.asarray(sel), jnp.asarray(psel), jnp.asarray(scat),
              p["iohw"])
            return out[:num_obj]


# ----------------------------------------------------------------------------
# Pure-numpy reference (mirrors the PyTorch code path, eval mode, no embed)
# ----------------------------------------------------------------------------
def _sigmoid(x):
    return 1.0 / (1.0 + np.exp(-x))


def reference(model, forest, features):
    p = {k: np.asarray(v, np.float32) for k, v in model.params.items()}
    feats = np.asarray(features, np.float32)
    H = model.out_dim
    N = feats.shape[0]
    out = np.zeros((N, H), np.float32)
    C, Hs = {}, {}

    if model.direction == "forward":
        nodes = []
        for tree in forest:
            _postorder(tree, nodes)
        for n in nodes:
            feat = feats[n.index:n.index + 1]
            if n.children:
                cc_list = [C[ch.index] for ch in n.children]
                ch_list = [Hs[ch.index] for ch in n.children]
            else:
                cc_list = [np.zeros((1, H), np.float32)]
                ch_list = [np.zeros((1, H), np.float32)]
            px = feat @ p["pxw"] + p["pxb"]
            h_sum = np.sum(np.concatenate(ch_list, 0), 0, keepdims=True)
            ioffu = (feat @ p["ioxw"] + p["ioxb"]
                     + h_sum @ p["iohw"] + p["iohb"])
            i = _sigmoid(ioffu[:, 0:H])
            o = _sigmoid(ioffu[:, H:2 * H])
            u = np.tanh(ioffu[:, 2 * H:3 * H])
            r = _sigmoid(ioffu[:, 3 * H:4 * H])
            fs = [_sigmoid(feat @ p["fxw"] + p["fxb"]
                           + chh @ p["fhw"] + p["fhb"]) for chh in ch_list]
            c = i * u + np.sum(
                np.concatenate([f * cc for f, cc in zip(fs, cc_list)], 0),
                0, keepdims=True)
            h = o * np.tanh(c)
            hf = r * h + (1 - r) * px
            C[n.index], Hs[n.index] = c, hf
            out[n.index] = hf[0]
    else:
        nodes = []
        for tree in forest:
            _preorder(tree, nodes)
        for n in nodes:
            feat = feats[n.index:n.index + 1]
            if n.parent is None or (n.parent.is_root and not model.pass_root):
                rc = np.zeros((1, H), np.float32)
                rh = np.zeros((1, H), np.float32)
            else:
                rc, rh = C[n.parent.index], Hs[n.parent.index]
            px = feat @ p["pxw"] + p["pxb"]
            iofu = feat @ p["ioxw"] + p["ioxb"] + rh @ p["iohw"] + p["iohb"]
            i = _sigmoid(iofu[:, 0:H])
            o = _sigmoid(iofu[:, H:2 * H])
            f = _sigmoid(iofu[:, 2 * H:3 * H])
            u = np.tanh(iofu[:, 3 * H:4 * H])
            r = _sigmoid(iofu[:, 4 * H:5 * H])
            c = i * u + f * rc
            h = o * np.tanh(c)
            hf = r * h + (1 - r) * px
            C[n.index], Hs[n.index] = c, hf
            out[n.index] = hf[0]
    return out


# ----------------------------------------------------------------------------
# Main
# ----------------------------------------------------------------------------
if __name__ == "__main__":
    num_obj = 8
    in_dim = 64
    out_dim = 128   # multiple of 128 -> lane-aligned gate slices / stores

    # Forest of 2 trees covering all 8 objects:
    #   tree0: 0 -> (1 -> (3, 4), 2)        tree1: 5 -> (6, 7)
    nodes = [Node(i) for i in range(num_obj)]
    nodes[0].add_child(nodes[1])
    nodes[0].add_child(nodes[2])
    nodes[1].add_child(nodes[3])
    nodes[1].add_child(nodes[4])
    nodes[5].add_child(nodes[6])
    nodes[5].add_child(nodes[7])
    forest = [nodes[0], nodes[5]]

    key = jax.random.PRNGKey(0)
    features = jax.random.normal(key, (num_obj, in_dim), jnp.float32)

    ok = True
    # NOTE(v7x): the two directions are independent; a bidirectional caller can
    # issue both pallas_calls back-to-back and let XLA overlap them on the 2 TCs.
    for direction in ("forward", "backward"):
        model = OneDirectionalTreeLSTMPallas(in_dim, out_dim, direction,
                                             dropout=0.0, pass_root=False,
                                             seed=42)
        out = model(forest, features, num_obj)
        out = jax.block_until_ready(out)
        ref = reference(model, forest, features)
        if not np.allclose(np.asarray(out), ref, atol=2e-4, rtol=2e-4):
            ok = False
            print(f"MISMATCH in direction={direction}: "
                  f"max err {np.max(np.abs(np.asarray(out) - ref))}")

    if ok:
        print("KERNEL_OK")
</pallas_src>

<mosaic_0001>
module attributes {stable_mosaic.version = 11 : i64} {
  func.func @_fwd_tree_kernel(%arg0: memref<8x64xf32, #tpu.memory_space<vmem>>, %arg1: memref<64x768xf32, #tpu.memory_space<vmem>>, %arg2: memref<1x768xf32, #tpu.memory_space<vmem>>, %arg3: memref<4x8x8xf32, #tpu.memory_space<vmem>>, %arg4: memref<4x16x8xf32, #tpu.memory_space<vmem>>, %arg5: memref<4x8x8xf32, #tpu.memory_space<vmem>>, %arg6: memref<128x512xf32, #tpu.memory_space<vmem>>, %arg7: memref<128x128xf32, #tpu.memory_space<vmem>>, %arg8: memref<8x128xf32, #tpu.memory_space<vmem>>) attributes {dimension_semantics = [], scalar_prefetch = 0 : i64, scratch_operands = 0 : i64, tpu.core_type = #tpu.core_type<tc>} {
    %c0 = arith.constant 0 : index
    %c0_0 = arith.constant 0 : index
    %0 = vector.load %arg0[%c0, %c0_0] : memref<8x64xf32, #tpu.memory_space<vmem>>, vector<8x64xf32>
    %c0_1 = arith.constant 0 : index
    %c0_2 = arith.constant 0 : index
    %1 = vector.load %arg1[%c0_1, %c0_2] : memref<64x768xf32, #tpu.memory_space<vmem>>, vector<64x768xf32>
    %cst = arith.constant dense<0.000000e+00> : vector<8x768xf32>
    %2 = tpu.matmul %0, %1, %cst {dimension_numbers = #tpu.dot_dimension_numbers<[1], [0], [0], [1], [0, 0, 1, 1], [], []>} : vector<8x64xf32>, vector<64x768xf32>, vector<8x768xf32> -> vector<8x768xf32>
    %c0_3 = arith.constant 0 : index
    %c0_4 = arith.constant 0 : index
    %3 = vector.load %arg2[%c0_3, %c0_4] : memref<1x768xf32, #tpu.memory_space<vmem>>, vector<1x768xf32>
    %4 = vector.broadcast %3 : vector<1x768xf32> to vector<8x768xf32>
    %5 = arith.addf %2, %4 : vector<8x768xf32>
    %c0_5 = arith.constant 0 : index
    %c0_6 = arith.constant 0 : index
    %6 = vector.load %arg6[%c0_5, %c0_6] : memref<128x512xf32, #tpu.memory_space<vmem>>, vector<128x512xf32>
    %c0_7 = arith.constant 0 : index
    %c0_8 = arith.constant 0 : index
    %7 = vector.load %arg7[%c0_7, %c0_8] : memref<128x128xf32, #tpu.memory_space<vmem>>, vector<128x128xf32>
    %cst_9 = arith.constant 0.000000e+00 : f32
    %8 = vector.broadcast %cst_9 : f32 to vector<8x256xf32>
    %c0_i32 = arith.constant 0 : i32
    %9 = arith.index_cast %c0_i32 : i32 to index
    %c0_10 = arith.constant 0 : index
    %c0_11 = arith.constant 0 : index
    %10 = vector.load %arg3[%9, %c0_10, %c0_11] : memref<4x8x8xf32, #tpu.memory_space<vmem>>, vector<1x8x8xf32>
    %11 = vector.shape_cast %10 : vector<1x8x8xf32> to vector<8x8xf32>
    %12 = arith.index_cast %c0_i32 : i32 to index
    %c0_12 = arith.constant 0 : index
    %c0_13 = arith.constant 0 : index
    %13 = vector.load %arg4[%12, %c0_12, %c0_13] : memref<4x16x8xf32, #tpu.memory_space<vmem>>, vector<1x16x8xf32>
    %14 = vector.shape_cast %13 : vector<1x16x8xf32> to vector<16x8xf32>
    %15 = arith.index_cast %c0_i32 : i32 to index
    %c0_14 = arith.constant 0 : index
    %c0_15 = arith.constant 0 : index
    %16 = vector.load %arg5[%15, %c0_14, %c0_15] : memref<4x8x8xf32, #tpu.memory_space<vmem>>, vector<1x8x8xf32>
    %17 = vector.shape_cast %16 : vector<1x8x8xf32> to vector<8x8xf32>
    %cst_16 = arith.constant dense<0.000000e+00> : vector<8x768xf32>
    %18 = tpu.matmul %11, %5, %cst_16 {dimension_numbers = #tpu.dot_dimension_numbers<[1], [0], [0], [1], [0, 0, 1, 1], [], []>} : vector<8x8xf32>, vector<8x768xf32>, vector<8x768xf32> -> vector<8x768xf32>
    %19 = vector.extract_strided_slice %18 {offsets = [0, 0], sizes = [8, 128], strides = [1, 1]} : vector<8x768xf32> to vector<8x128xf32>
    %20 = vector.extract_strided_slice %18 {offsets = [0, 128], sizes = [8, 512], strides = [1, 1]} : vector<8x768xf32> to vector<8x512xf32>
    %21 = vector.extract_strided_slice %18 {offsets = [0, 640], sizes = [8, 128], strides = [1, 1]} : vector<8x768xf32> to vector<8x128xf32>
    %cst_17 = arith.constant dense<0.000000e+00> : vector<16x256xf32>
    %22 = tpu.matmul %14, %8, %cst_17 {dimension_numbers = #tpu.dot_dimension_numbers<[1], [0], [0], [1], [0, 0, 1, 1], [], []>} : vector<16x8xf32>, vector<8x256xf32>, vector<16x256xf32> -> vector<16x256xf32>
    %23 = vector.extract_strided_slice %22 {offsets = [0, 0], sizes = [16, 128], strides = [1, 1]} : vector<16x256xf32> to vector<16x128xf32>
    %24 = vector.extract_strided_slice %22 {offsets = [0, 128], sizes = [16, 128], strides = [1, 1]} : vector<16x256xf32> to vector<16x128xf32>
    %25 = tpu.concatenate %21, %21 in 0 : vector<8x128xf32>, vector<8x128xf32> -> vector<16x128xf32>
    %cst_18 = arith.constant dense<0.000000e+00> : vector<16x128xf32>
    %26 = tpu.matmul %23, %7, %cst_18 {dimension_numbers = #tpu.dot_dimension_numbers<[1], [0], [0], [1], [0, 0, 1, 1], [], []>} : vector<16x128xf32>, vector<128x128xf32>, vector<16x128xf32> -> vector<16x128xf32>
    %27 = arith.addf %25, %26 : vector<16x128xf32>
    %28 = arith.negf %27 : vector<16x128xf32>
    %29 = math.exp %28 : vector<16x128xf32>
    %cst_19 = arith.constant 1.000000e+00 : f32
    %30 = vector.broadcast %cst_19 : f32 to vector<16x128xf32>
    %31 = arith.addf %30, %29 : vector<16x128xf32>
    %32 = arith.divf %30, %31 : vector<16x128xf32>
    %33 = arith.mulf %32, %24 : vector<16x128xf32>
    %34 = vector.shape_cast %33 : vector<16x128xf32> to vector<2x8x128xf32>
    %cst_20 = arith.constant dense<0.000000e+00> : vector<8x128xf32>
    %35 = vector.multi_reduction <add>, %34, %cst_20 [0] : vector<2x8x128xf32> to vector<8x128xf32>
    %36 = vector.shape_cast %23 : vector<16x128xf32> to vector<2x8x128xf32>
    %cst_21 = arith.constant dense<0.000000e+00> : vector<8x128xf32>
    %37 = vector.multi_reduction <add>, %36, %cst_21 [0] : vector<2x8x128xf32> to vector<8x128xf32>
    %cst_22 = arith.constant dense<0.000000e+00> : vector<8x512xf32>
    %38 = tpu.matmul %37, %6, %cst_22 {dimension_numbers = #tpu.dot_dimension_numbers<[1], [0], [0], [1], [0, 0, 1, 1], [], []>} : vector<8x128xf32>, vector<128x512xf32>, vector<8x512xf32> -> vector<8x512xf32>
    %39 = arith.addf %20, %38 : vector<8x512xf32>
    %40 = vector.extract_strided_slice %39 {offsets = [0, 0], sizes = [8, 128], strides = [1, 1]} : vector<8x512xf32> to vector<8x128xf32>
    %41 = arith.negf %40 : vector<8x128xf32>
    %42 = math.exp %41 : vector<8x128xf32>
    %cst_23 = arith.constant 1.000000e+00 : f32
    %43 = vector.broadcast %cst_23 : f32 to vector<8x128xf32>
    %44 = arith.addf %43, %42 : vector<8x128xf32>
    %45 = arith.divf %43, %44 : vector<8x128xf32>
    %46 = vector.extract_strided_slice %39 {offsets = [0, 128], sizes = [8, 128], strides = [1, 1]} : vector<8x512xf32> to vector<8x128xf32>
    %47 = arith.negf %46 : vector<8x128xf32>
    %48 = math.exp %47 : vector<8x128xf32>
    %cst_24 = arith.constant 1.000000e+00 : f32
    %49 = vector.broadcast %cst_24 : f32 to vector<8x128xf32>
    %50 = arith.addf %49, %48 : vector<8x128xf32>
    %51 = arith.divf %49, %50 : vector<8x128xf32>
    %52 = vector.extract_strided_slice %39 {offsets = [0, 256], sizes = [8, 128], strides = [1, 1]} : vector<8x512xf32> to vector<8x128xf32>
    %53 = math.tanh %52 : vector<8x128xf32>
    %54 = vector.extract_strided_slice %39 {offsets = [0, 384], sizes = [8, 128], strides = [1, 1]} : vector<8x512xf32> to vector<8x128xf32>
    %55 = arith.negf %54 : vector<8x128xf32>
    %56 = math.exp %55 : vector<8x128xf32>
    %cst_25 = arith.constant 1.000000e+00 : f32
    %57 = vector.broadcast %cst_25 : f32 to vector<8x128xf32>
    %58 = arith.addf %57, %56 : vector<8x128xf32>
    %59 = arith.divf %57, %58 : vector<8x128xf32>
    %60 = arith.mulf %45, %53 : vector<8x128xf32>
    %61 = arith.addf %60, %35 : vector<8x128xf32>
    %62 = math.tanh %61 : vector<8x128xf32>
    %63 = arith.mulf %51, %62 : vector<8x128xf32>
    %64 = arith.mulf %59, %63 : vector<8x128xf32>
    %cst_26 = arith.constant 1.000000e+00 : f32
    %65 = vector.broadcast %cst_26 : f32 to vector<8x128xf32>
    %66 = arith.subf %65, %59 : vector<8x128xf32>
    %67 = arith.mulf %66, %19 : vector<8x128xf32>
    %68 = arith.addf %64, %67 : vector<8x128xf32>
    %69 = tpu.concatenate %68, %61 in 1 : vector<8x128xf32>, vector<8x128xf32> -> vector<8x256xf32>
    %cst_27 = arith.constant dense<0.000000e+00> : vector<8x256xf32>
    %70 = tpu.matmul %17, %69, %cst_27 {dimension_numbers = #tpu.dot_dimension_numbers<[1], [0], [0], [1], [0, 0, 1, 1], [], []>} : vector<8x8xf32>, vector<8x256xf32>, vector<8x256xf32> -> vector<8x256xf32>
    %71 = arith.addf %8, %70 : vector<8x256xf32>
    %c1_i32 = arith.constant 1 : i32
    %72 = arith.index_cast %c1_i32 : i32 to index
    %c0_28 = arith.constant 0 : index
    %c0_29 = arith.constant 0 : index
    %73 = vector.load %arg3[%72, %c0_28, %c0_29] : memref<4x8x8xf32, #tpu.memory_space<vmem>>, vector<1x8x8xf32>
    %74 = vector.shape_cast %73 : vector<1x8x8xf32> to vector<8x8xf32>
    %75 = arith.index_cast %c1_i32 : i32 to index
    %c0_30 = arith.constant 0 : index
    %c0_31 = arith.constant 0 : index
    %76 = vector.load %arg4[%75, %c0_30, %c0_31] : memref<4x16x8xf32, #tpu.memory_space<vmem>>, vector<1x16x8xf32>
    %77 = vector.shape_cast %76 : vector<1x16x8xf32> to vector<16x8xf32>
    %78 = arith.index_cast %c1_i32 : i32 to index
    %c0_32 = arith.constant 0 : index
    %c0_33 = arith.constant 0 : index
    %79 = vector.load %arg5[%78, %c0_32, %c0_33] : memref<4x8x8xf32, #tpu.memory_space<vmem>>, vector<1x8x8xf32>
    %80 = vector.shape_cast %79 : vector<1x8x8xf32> to vector<8x8xf32>
    %cst_34 = arith.constant dense<0.000000e+00> : vector<8x768xf32>
    %81 = tpu.matmul %74, %5, %cst_34 {dimension_numbers = #tpu.dot_dimension_numbers<[1], [0], [0], [1], [0, 0, 1, 1], [], []>} : vector<8x8xf32>, vector<8x768xf32>, vector<8x768xf32> -> vector<8x768xf32>
    %82 = vector.extract_strided_slice %81 {offsets = [0, 0], sizes = [8, 128], strides = [1, 1]} : vector<8x768xf32> to vector<8x128xf32>
    %83 = vector.extract_strided_slice %81 {offsets = [0, 128], sizes = [8, 512], strides = [1, 1]} : vector<8x768xf32> to vector<8x512xf32>
    %84 = vector.extract_strided_slice %81 {offsets = [0, 640], sizes = [8, 128], strides = [1, 1]} : vector<8x768xf32> to vector<8x128xf32>
    %cst_35 = arith.constant dense<0.000000e+00> : vector<16x256xf32>
    %85 = tpu.matmul %77, %71, %cst_35 {dimension_numbers = #tpu.dot_dimension_numbers<[1], [0], [0], [1], [0, 0, 1, 1], [], []>} : vector<16x8xf32>, vector<8x256xf32>, vector<16x256xf32> -> vector<16x256xf32>
    %86 = vector.extract_strided_slice %85 {offsets = [0, 0], sizes = [16, 128], strides = [1, 1]} : vector<16x256xf32> to vector<16x128xf32>
    %87 = vector.extract_strided_slice %85 {offsets = [0, 128], sizes = [16, 128], strides = [1, 1]} : vector<16x256xf32> to vector<16x128xf32>
    %88 = tpu.concatenate %84, %84 in 0 : vector<8x128xf32>, vector<8x128xf32> -> vector<16x128xf32>
    %cst_36 = arith.constant dense<0.000000e+00> : vector<16x128xf32>
    %89 = tpu.matmul %86, %7, %cst_36 {dimension_numbers = #tpu.dot_dimension_numbers<[1], [0], [0], [1], [0, 0, 1, 1], [], []>} : vector<16x128xf32>, vector<128x128xf32>, vector<16x128xf32> -> vector<16x128xf32>
    %90 = arith.addf %88, %89 : vector<16x128xf32>
    %91 = arith.negf %90 : vector<16x128xf32>
    %92 = math.exp %91 : vector<16x128xf32>
    %cst_37 = arith.constant 1.000000e+00 : f32
    %93 = vector.broadcast %cst_37 : f32 to vector<16x128xf32>
    %94 = arith.addf %93, %92 : vector<16x128xf32>
    %95 = arith.divf %93, %94 : vector<16x128xf32>
    %96 = arith.mulf %95, %87 : vector<16x128xf32>
    %97 = vector.shape_cast %96 : vector<16x128xf32> to vector<2x8x128xf32>
    %cst_38 = arith.constant dense<0.000000e+00> : vector<8x128xf32>
    %98 = vector.multi_reduction <add>, %97, %cst_38 [0] : vector<2x8x128xf32> to vector<8x128xf32>
    %99 = vector.shape_cast %86 : vector<16x128xf32> to vector<2x8x128xf32>
    %cst_39 = arith.constant dense<0.000000e+00> : vector<8x128xf32>
    %100 = vector.multi_reduction <add>, %99, %cst_39 [0] : vector<2x8x128xf32> to vector<8x128xf32>
    %cst_40 = arith.constant dense<0.000000e+00> : vector<8x512xf32>
    %101 = tpu.matmul %100, %6, %cst_40 {dimension_numbers = #tpu.dot_dimension_numbers<[1], [0], [0], [1], [0, 0, 1, 1], [], []>} : vector<8x128xf32>, vector<128x512xf32>, vector<8x512xf32> -> vector<8x512xf32>
    %102 = arith.addf %83, %101 : vector<8x512xf32>
    %103 = vector.extract_strided_slice %102 {offsets = [0, 0], sizes = [8, 128], strides = [1, 1]} : vector<8x512xf32> to vector<8x128xf32>
    %104 = arith.negf %103 : vector<8x128xf32>
    %105 = math.exp %104 : vector<8x128xf32>
    %cst_41 = arith.constant 1.000000e+00 : f32
    %106 = vector.broadcast %cst_41 : f32 to vector<8x128xf32>
    %107 = arith.addf %106, %105 : vector<8x128xf32>
    %108 = arith.divf %106, %107 : vector<8x128xf32>
    %109 = vector.extract_strided_slice %102 {offsets = [0, 128], sizes = [8, 128], strides = [1, 1]} : vector<8x512xf32> to vector<8x128xf32>
    %110 = arith.negf %109 : vector<8x128xf32>
    %111 = math.exp %110 : vector<8x128xf32>
    %cst_42 = arith.constant 1.000000e+00 : f32
    %112 = vector.broadcast %cst_42 : f32 to vector<8x128xf32>
    %113 = arith.addf %112, %111 : vector<8x128xf32>
    %114 = arith.divf %112, %113 : vector<8x128xf32>
    %115 = vector.extract_strided_slice %102 {offsets = [0, 256], sizes = [8, 128], strides = [1, 1]} : vector<8x512xf32> to vector<8x128xf32>
    %116 = math.tanh %115 : vector<8x128xf32>
    %117 = vector.extract_strided_slice %102 {offsets = [0, 384], sizes = [8, 128], strides = [1, 1]} : vector<8x512xf32> to vector<8x128xf32>
    %118 = arith.negf %117 : vector<8x128xf32>
    %119 = math.exp %118 : vector<8x128xf32>
    %cst_43 = arith.constant 1.000000e+00 : f32
    %120 = vector.broadcast %cst_43 : f32 to vector<8x128xf32>
    %121 = arith.addf %120, %119 : vector<8x128xf32>
    %122 = arith.divf %120, %121 : vector<8x128xf32>
    %123 = arith.mulf %108, %116 : vector<8x128xf32>
    %124 = arith.addf %123, %98 : vector<8x128xf32>
    %125 = math.tanh %124 : vector<8x128xf32>
    %126 = arith.mulf %114, %125 : vector<8x128xf32>
    %127 = arith.mulf %122, %126 : vector<8x128xf32>
    %cst_44 = arith.constant 1.000000e+00 : f32
    %128 = vector.broadcast %cst_44 : f32 to vector<8x128xf32>
    %129 = arith.subf %128, %122 : vector<8x128xf32>
    %130 = arith.mulf %129, %82 : vector<8x128xf32>
    %131 = arith.addf %127, %130 : vector<8x128xf32>
    %132 = tpu.concatenate %131, %124 in 1 : vector<8x128xf32>, vector<8x128xf32> -> vector<8x256xf32>
    %cst_45 = arith.constant dense<0.000000e+00> : vector<8x256xf32>
    %133 = tpu.matmul %80, %132, %cst_45 {dimension_numbers = #tpu.dot_dimension_numbers<[1], [0], [0], [1], [0, 0, 1, 1], [], []>} : vector<8x8xf32>, vector<8x256xf32>, vector<8x256xf32> -> vector<8x256xf32>
    %134 = arith.addf %71, %133 : vector<8x256xf32>
    %c2_i32 = arith.constant 2 : i32
    %135 = arith.index_cast %c2_i32 : i32 to index
    %c0_46 = arith.constant 0 : index
    %c0_47 = arith.constant 0 : index
    %136 = vector.load %arg3[%135, %c0_46, %c0_47] : memref<4x8x8xf32, #tpu.memory_space<vmem>>, vector<1x8x8xf32>
    %137 = vector.shape_cast %136 : vector<1x8x8xf32> to vector<8x8xf32>
    %138 = arith.index_cast %c2_i32 : i32 to index
    %c0_48 = arith.constant 0 : index
    %c0_49 = arith.constant 0 : index
    %139 = vector.load %arg4[%138, %c0_48, %c0_49] : memref<4x16x8xf32, #tpu.memory_space<vmem>>, vector<1x16x8xf32>
    %140 = vector.shape_cast %139 : vector<1x16x8xf32> to vector<16x8xf32>
    %141 = arith.index_cast %c2_i32 : i32 to index
    %c0_50 = arith.constant 0 : index
    %c0_51 = arith.constant 0 : index
    %142 = vector.load %arg5[%141, %c0_50, %c0_51] : memref<4x8x8xf32, #tpu.memory_space<vmem>>, vector<1x8x8xf32>
    %143 = vector.shape_cast %142 : vector<1x8x8xf32> to vector<8x8xf32>
    %cst_52 = arith.constant dense<0.000000e+00> : vector<8x768xf32>
    %144 = tpu.matmul %137, %5, %cst_52 {dimension_numbers = #tpu.dot_dimension_numbers<[1], [0], [0], [1], [0, 0, 1, 1], [], []>} : vector<8x8xf32>, vector<8x768xf32>, vector<8x768xf32> -> vector<8x768xf32>
    %145 = vector.extract_strided_slice %144 {offsets = [0, 0], sizes = [8, 128], strides = [1, 1]} : vector<8x768xf32> to vector<8x128xf32>
    %146 = vector.extract_strided_slice %144 {offsets = [0, 128], sizes = [8, 512], strides = [1, 1]} : vector<8x768xf32> to vector<8x512xf32>
    %147 = vector.extract_strided_slice %144 {offsets = [0, 640], sizes = [8, 128], strides = [1, 1]} : vector<8x768xf32> to vector<8x128xf32>
    %cst_53 = arith.constant dense<0.000000e+00> : vector<16x256xf32>
    %148 = tpu.matmul %140, %134, %cst_53 {dimension_numbers = #tpu.dot_dimension_numbers<[1], [0], [0], [1], [0, 0, 1, 1], [], []>} : vector<16x8xf32>, vector<8x256xf32>, vector<16x256xf32> -> vector<16x256xf32>
    %149 = vector.extract_strided_slice %148 {offsets = [0, 0], sizes = [16, 128], strides = [1, 1]} : vector<16x256xf32> to vector<16x128xf32>
    %150 = vector.extract_strided_slice %148 {offsets = [0, 128], sizes = [16, 128], strides = [1, 1]} : vector<16x256xf32> to vector<16x128xf32>
    %151 = tpu.concatenate %147, %147 in 0 : vector<8x128xf32>, vector<8x128xf32> -> vector<16x128xf32>
    %cst_54 = arith.constant dense<0.000000e+00> : vector<16x128xf32>
    %152 = tpu.matmul %149, %7, %cst_54 {dimension_numbers = #tpu.dot_dimension_numbers<[1], [0], [0], [1], [0, 0, 1, 1], [], []>} : vector<16x128xf32>, vector<128x128xf32>, vector<16x128xf32> -> vector<16x128xf32>
    %153 = arith.addf %151, %152 : vector<16x128xf32>
    %154 = arith.negf %153 : vector<16x128xf32>
    %155 = math.exp %154 : vector<16x128xf32>
    %cst_55 = arith.constant 1.000000e+00 : f32
    %156 = vector.broadcast %cst_55 : f32 to vector<16x128xf32>
    %157 = arith.addf %156, %155 : vector<16x128xf32>
    %158 = arith.divf %156, %157 : vector<16x128xf32>
    %159 = arith.mulf %158, %150 : vector<16x128xf32>
    %160 = vector.shape_cast %159 : vector<16x128xf32> to vector<2x8x128xf32>
    %cst_56 = arith.constant dense<0.000000e+00> : vector<8x128xf32>
    %161 = vector.multi_reduction <add>, %160, %cst_56 [0] : vector<2x8x128xf32> to vector<8x128xf32>
    %162 = vector.shape_cast %149 : vector<16x128xf32> to vector<2x8x128xf32>
    %cst_57 = arith.constant dense<0.000000e+00> : vector<8x128xf32>
    %163 = vector.multi_reduction <add>, %162, %cst_57 [0] : vector<2x8x128xf32> to vector<8x128xf32>
    %cst_58 = arith.constant dense<0.000000e+00> : vector<8x512xf32>
    %164 = tpu.matmul %163, %6, %cst_58 {dimension_numbers = #tpu.dot_dimension_numbers<[1], [0], [0], [1], [0, 0, 1, 1], [], []>} : vector<8x128xf32>, vector<128x512xf32>, vector<8x512xf32> -> vector<8x512xf32>
    %165 = arith.addf %146, %164 : vector<8x512xf32>
    %166 = vector.extract_strided_slice %165 {offsets = [0, 0], sizes = [8, 128], strides = [1, 1]} : vector<8x512xf32> to vector<8x128xf32>
    %167 = arith.negf %166 : vector<8x128xf32>
    %168 = math.exp %167 : vector<8x128xf32>
    %cst_59 = arith.constant 1.000000e+00 : f32
    %169 = vector.broadcast %cst_59 : f32 to vector<8x128xf32>
    %170 = arith.addf %169, %168 : vector<8x128xf32>
    %171 = arith.divf %169, %170 : vector<8x128xf32>
    %172 = vector.extract_strided_slice %165 {offsets = [0, 128], sizes = [8, 128], strides = [1, 1]} : vector<8x512xf32> to vector<8x128xf32>
    %173 = arith.negf %172 : vector<8x128xf32>
    %174 = math.exp %173 : vector<8x128xf32>
    %cst_60 = arith.constant 1.000000e+00 : f32
    %175 = vector.broadcast %cst_60 : f32 to vector<8x128xf32>
    %176 = arith.addf %175, %174 : vector<8x128xf32>
    %177 = arith.divf %175, %176 : vector<8x128xf32>
    %178 = vector.extract_strided_slice %165 {offsets = [0, 256], sizes = [8, 128], strides = [1, 1]} : vector<8x512xf32> to vector<8x128xf32>
    %179 = math.tanh %178 : vector<8x128xf32>
    %180 = vector.extract_strided_slice %165 {offsets = [0, 384], sizes = [8, 128], strides = [1, 1]} : vector<8x512xf32> to vector<8x128xf32>
    %181 = arith.negf %180 : vector<8x128xf32>
    %182 = math.exp %181 : vector<8x128xf32>
    %cst_61 = arith.constant 1.000000e+00 : f32
    %183 = vector.broadcast %cst_61 : f32 to vector<8x128xf32>
    %184 = arith.addf %183, %182 : vector<8x128xf32>
    %185 = arith.divf %183, %184 : vector<8x128xf32>
    %186 = arith.mulf %171, %179 : vector<8x128xf32>
    %187 = arith.addf %186, %161 : vector<8x128xf32>
    %188 = math.tanh %187 : vector<8x128xf32>
    %189 = arith.mulf %177, %188 : vector<8x128xf32>
    %190 = arith.mulf %185, %189 : vector<8x128xf32>
    %cst_62 = arith.constant 1.000000e+00 : f32
    %191 = vector.broadcast %cst_62 : f32 to vector<8x128xf32>
    %192 = arith.subf %191, %185 : vector<8x128xf32>
    %193 = arith.mulf %192, %145 : vector<8x128xf32>
    %194 = arith.addf %190, %193 : vector<8x128xf32>
    %195 = tpu.concatenate %194, %187 in 1 : vector<8x128xf32>, vector<8x128xf32> -> vector<8x256xf32>
    %cst_63 = arith.constant dense<0.000000e+00> : vector<8x256xf32>
    %196 = tpu.matmul %143, %195, %cst_63 {dimension_numbers = #tpu.dot_dimension_numbers<[1], [0], [0], [1], [0, 0, 1, 1], [], []>} : vector<8x8xf32>, vector<8x256xf32>, vector<8x256xf32> -> vector<8x256xf32>
    %197 = arith.addf %134, %196 : vector<8x256xf32>
    %c3_i32 = arith.constant 3 : i32
    %198 = arith.index_cast %c3_i32 : i32 to index
    %c0_64 = arith.constant 0 : index
    %c0_65 = arith.constant 0 : index
    %199 = vector.load %arg3[%198, %c0_64, %c0_65] : memref<4x8x8xf32, #tpu.memory_space<vmem>>, vector<1x8x8xf32>
    %200 = vector.shape_cast %199 : vector<1x8x8xf32> to vector<8x8xf32>
    %201 = arith.index_cast %c3_i32 : i32 to index
    %c0_66 = arith.constant 0 : index
    %c0_67 = arith.constant 0 : index
    %202 = vector.load %arg4[%201, %c0_66, %c0_67] : memref<4x16x8xf32, #tpu.memory_space<vmem>>, vector<1x16x8xf32>
    %203 = vector.shape_cast %202 : vector<1x16x8xf32> to vector<16x8xf32>
    %204 = arith.index_cast %c3_i32 : i32 to index
    %c0_68 = arith.constant 0 : index
    %c0_69 = arith.constant 0 : index
    %205 = vector.load %arg5[%204, %c0_68, %c0_69] : memref<4x8x8xf32, #tpu.memory_space<vmem>>, vector<1x8x8xf32>
    %206 = vector.shape_cast %205 : vector<1x8x8xf32> to vector<8x8xf32>
    %cst_70 = arith.constant dense<0.000000e+00> : vector<8x768xf32>
    %207 = tpu.matmul %200, %5, %cst_70 {dimension_numbers = #tpu.dot_dimension_numbers<[1], [0], [0], [1], [0, 0, 1, 1], [], []>} : vector<8x8xf32>, vector<8x768xf32>, vector<8x768xf32> -> vector<8x768xf32>
    %208 = vector.extract_strided_slice %207 {offsets = [0, 0], sizes = [8, 128], strides = [1, 1]} : vector<8x768xf32> to vector<8x128xf32>
    %209 = vector.extract_strided_slice %207 {offsets = [0, 128], sizes = [8, 512], strides = [1, 1]} : vector<8x768xf32> to vector<8x512xf32>
    %210 = vector.extract_strided_slice %207 {offsets = [0, 640], sizes = [8, 128], strides = [1, 1]} : vector<8x768xf32> to vector<8x128xf32>
    %cst_71 = arith.constant dense<0.000000e+00> : vector<16x256xf32>
    %211 = tpu.matmul %203, %197, %cst_71 {dimension_numbers = #tpu.dot_dimension_numbers<[1], [0], [0], [1], [0, 0, 1, 1], [], []>} : vector<16x8xf32>, vector<8x256xf32>, vector<16x256xf32> -> vector<16x256xf32>
    %212 = vector.extract_strided_slice %211 {offsets = [0, 0], sizes = [16, 128], strides = [1, 1]} : vector<16x256xf32> to vector<16x128xf32>
    %213 = vector.extract_strided_slice %211 {offsets = [0, 128], sizes = [16, 128], strides = [1, 1]} : vector<16x256xf32> to vector<16x128xf32>
    %214 = tpu.concatenate %210, %210 in 0 : vector<8x128xf32>, vector<8x128xf32> -> vector<16x128xf32>
    %cst_72 = arith.constant dense<0.000000e+00> : vector<16x128xf32>
    %215 = tpu.matmul %212, %7, %cst_72 {dimension_numbers = #tpu.dot_dimension_numbers<[1], [0], [0], [1], [0, 0, 1, 1], [], []>} : vector<16x128xf32>, vector<128x128xf32>, vector<16x128xf32> -> vector<16x128xf32>
    %216 = arith.addf %214, %215 : vector<16x128xf32>
    %217 = arith.negf %216 : vector<16x128xf32>
    %218 = math.exp %217 : vector<16x128xf32>
    %cst_73 = arith.constant 1.000000e+00 : f32
    %219 = vector.broadcast %cst_73 : f32 to vector<16x128xf32>
    %220 = arith.addf %219, %218 : vector<16x128xf32>
    %221 = arith.divf %219, %220 : vector<16x128xf32>
    %222 = arith.mulf %221, %213 : vector<16x128xf32>
    %223 = vector.shape_cast %222 : vector<16x128xf32> to vector<2x8x128xf32>
    %cst_74 = arith.constant dense<0.000000e+00> : vector<8x128xf32>
    %224 = vector.multi_reduction <add>, %223, %cst_74 [0] : vector<2x8x128xf32> to vector<8x128xf32>
    %225 = vector.shape_cast %212 : vector<16x128xf32> to vector<2x8x128xf32>
    %cst_75 = arith.constant dense<0.000000e+00> : vector<8x128xf32>
    %226 = vector.multi_reduction <add>, %225, %cst_75 [0] : vector<2x8x128xf32> to vector<8x128xf32>
    %cst_76 = arith.constant dense<0.000000e+00> : vector<8x512xf32>
    %227 = tpu.matmul %226, %6, %cst_76 {dimension_numbers = #tpu.dot_dimension_numbers<[1], [0], [0], [1], [0, 0, 1, 1], [], []>} : vector<8x128xf32>, vector<128x512xf32>, vector<8x512xf32> -> vector<8x512xf32>
    %228 = arith.addf %209, %227 : vector<8x512xf32>
    %229 = vector.extract_strided_slice %228 {offsets = [0, 0], sizes = [8, 128], strides = [1, 1]} : vector<8x512xf32> to vector<8x128xf32>
    %230 = arith.negf %229 : vector<8x128xf32>
    %231 = math.exp %230 : vector<8x128xf32>
    %cst_77 = arith.constant 1.000000e+00 : f32
    %232 = vector.broadcast %cst_77 : f32 to vector<8x128xf32>
    %233 = arith.addf %232, %231 : vector<8x128xf32>
    %234 = arith.divf %232, %233 : vector<8x128xf32>
    %235 = vector.extract_strided_slice %228 {offsets = [0, 128], sizes = [8, 128], strides = [1, 1]} : vector<8x512xf32> to vector<8x128xf32>
    %236 = arith.negf %235 : vector<8x128xf32>
    %237 = math.exp %236 : vector<8x128xf32>
    %cst_78 = arith.constant 1.000000e+00 : f32
    %238 = vector.broadcast %cst_78 : f32 to vector<8x128xf32>
    %239 = arith.addf %238, %237 : vector<8x128xf32>
    %240 = arith.divf %238, %239 : vector<8x128xf32>
    %241 = vector.extract_strided_slice %228 {offsets = [0, 256], sizes = [8, 128], strides = [1, 1]} : vector<8x512xf32> to vector<8x128xf32>
    %242 = math.tanh %241 : vector<8x128xf32>
    %243 = vector.extract_strided_slice %228 {offsets = [0, 384], sizes = [8, 128], strides = [1, 1]} : vector<8x512xf32> to vector<8x128xf32>
    %244 = arith.negf %243 : vector<8x128xf32>
    %245 = math.exp %244 : vector<8x128xf32>
    %cst_79 = arith.constant 1.000000e+00 : f32
    %246 = vector.broadcast %cst_79 : f32 to vector<8x128xf32>
    %247 = arith.addf %246, %245 : vector<8x128xf32>
    %248 = arith.divf %246, %247 : vector<8x128xf32>
    %249 = arith.mulf %234, %242 : vector<8x128xf32>
    %250 = arith.addf %249, %224 : vector<8x128xf32>
    %251 = math.tanh %250 : vector<8x128xf32>
    %252 = arith.mulf %240, %251 : vector<8x128xf32>
    %253 = arith.mulf %248, %252 : vector<8x128xf32>
    %cst_80 = arith.constant 1.000000e+00 : f32
    %254 = vector.broadcast %cst_80 : f32 to vector<8x128xf32>
    %255 = arith.subf %254, %248 : vector<8x128xf32>
    %256 = arith.mulf %255, %208 : vector<8x128xf32>
    %257 = arith.addf %253, %256 : vector<8x128xf32>
    %258 = tpu.concatenate %257, %250 in 1 : vector<8x128xf32>, vector<8x128xf32> -> vector<8x256xf32>
    %cst_81 = arith.constant dense<0.000000e+00> : vector<8x256xf32>
    %259 = tpu.matmul %206, %258, %cst_81 {dimension_numbers = #tpu.dot_dimension_numbers<[1], [0], [0], [1], [0, 0, 1, 1], [], []>} : vector<8x8xf32>, vector<8x256xf32>, vector<8x256xf32> -> vector<8x256xf32>
    %260 = arith.addf %197, %259 : vector<8x256xf32>
    %c4_i32 = arith.constant 4 : i32
    %261 = vector.extract_strided_slice %260 {offsets = [0, 0], sizes = [8, 128], strides = [1, 1]} : vector<8x256xf32> to vector<8x128xf32>
    %c0_82 = arith.constant 0 : index
    %c0_83 = arith.constant 0 : index
    %262 = vector.load %arg8[%c0_82, %c0_83] : memref<8x128xf32, #tpu.memory_space<vmem>>, vector<8x128xf32>
    tpu.vector_store %arg8[%c0_82, %c0_83], %261 {strides = array<i32>} : memref<8x128xf32, #tpu.memory_space<vmem>>, vector<8x128xf32>,
    return
  }
}

</mosaic_0001>

<bundles_post_ra>
// kernel: tpu_custom_call.1
= control target key start
LH: loop header
LB: loop body
LE: loop exit
PB: predicated region body
PF: predicated region fallthrough
CT: control target
= control target key end

     0   :  { %13 = vsyncpa [#allocation3], 0  ;;  %s3440_s0 = inlined_call_operand.vmem [shape: f32[8,64], index: 0, kind: input, shape index: {}]   ;;  %s3441_s1 = inlined_call_operand.hbm [shape: f32[64,768], index: 1, kind: input, shape index: {}]   ;;  %s3442_s2 = inlined_call_operand.vmem [shape: f32[1,768], index: 2, kind: input, shape index: {}]   ;;  %s3443_s3 = inlined_call_operand.vmem [shape: f32[4,8,8], index: 3, kind: input, shape index: {}]   ;;  %s3444_s4 = inlined_call_operand.vmem [shape: f32[4,16,8], index: 4, kind: input, shape index: {}]   ;;  %s3445_s5 = inlined_call_operand.vmem [shape: f32[4,8,8], index: 5, kind: input, shape index: {}]   ;;  %s3446_s6 = inlined_call_operand.hbm [shape: f32[128,512], index: 6, kind: input, shape index: {}]   ;;  %s3447_s7 = inlined_call_operand.hbm [shape: f32[128,128], index: 7, kind: input, shape index: {}]   ;;  %s3448_s8 = inlined_call_operand.hbm [shape: f32[8,128], index: 8, kind: output, shape index: {}]  }
   0x1   :  { %14 = vsyncpa [#allocation6], 0  ;;  %s43_s29 = sshll.u32 %s3446_s6, 4  ;;  %s44_s29 = int_to_ptr.hbm [resolvable:$true] %s43_s29 }
   0x2   :  { %15 = vsyncpa [#allocation4], 0  ;;  %s2463_s30 = smov [#allocation5]   ;;  %s22_s12 = sshll.u32 %s3441_s1, 4  ;;  %s23_s12 = int_to_ptr.hbm [resolvable:$true] %s22_s12 }
   0x3   :  { %s45_s9 = sshll.u32 %s2463_s30, 4  ;;  %s2464_s13 = smov 512   ;;  %s46_s9 = int_to_ptr.vmem [resolvable:$true] %s45_s9 }
   0x4   :  { %s2465_s14 = smov 32   ;;  %s2466_s15 = smov [#allocation2]  }
   0x5   :  { %51 = dma.hbm_to_vmem [thread:$0]  %s44_s29, 8192, %s46_s9, [#allocation6], %s2464_s13, %s2464_s13, %s2465_s14  }
   0x6   :  { %s24_s16 = sshll.u32 %s2466_s15, 4  ;;  %s2467_s17 = smov 768   ;;  %s25_s16 = int_to_ptr.vmem [resolvable:$true] %s24_s16 }
   0x7   :  { %s2468_s18 = smov 48   ;;  %s56_s20 = sshll.u32 %s3447_s7, 4  ;;  %s57_s20 = int_to_ptr.hbm [resolvable:$true] %s56_s20 }
   0x8   :  { %30 = dma.hbm_to_vmem [thread:$0]  %s23_s12, 6144, %s25_s16, [#allocation3], %s2467_s17, %s2467_s17, %s2468_s18  }
   0x9   :  { %s2469_s21 = smov [#allocation7]   ;;  %s2470_s23 = smov 128  }
   0xa   :  { %s58_s22 = sshll.u32 %s2469_s21, 4  ;;  %s2471_s1 = smov 8   ;;  %s59_s22 = int_to_ptr.vmem [resolvable:$true] %s58_s22 }
   0xb   :  { %64 = dma.hbm_to_vmem [thread:$0]  %s57_s20, 2048, %s59_s22, [#allocation6], %s2470_s23, %s2470_s23, %s2471_s1  }
   0xc   :  { %2457 = dma.done.wait [#allocation3], 6144  }
   0xd   :  { %2458 = vsyncadd [#allocation3], 4294961152 }
   0xe   :  { %2459 = dma.done.wait [#allocation6], 10240  }
   0xf   :  { %2460 = vsyncadd [#allocation6], 4294957056  ;;  %v120_v0 = vld [vmem:[#allocation2 + $0x150] sm:$0xff]  ;;  %v122_v1 = vld [vmem:[#allocation2 + $0x160] sm:$0xff]  ;;  %vm140_vm0 = vcmask 523264   ;;  %vm348_vm1 = vcmask 64512  }
  0x10   :  { %v114_v2 = vld [vmem:[#allocation2 + $0x120] sm:$0xff]  ;;  %152 = vmatpush.msra.mxu0 %v120_v0  ;;  %192 = vmatpush.msra.mxu2 %v122_v1  ;;  %v116_v3 = vld [vmem:[#allocation2 + $0x130] sm:$0xff]  ;;  %v121_v8 = vld [vmem:[#allocation2 + $0x158] sm:$0xff]  ;;  %v2472_v57 = vmov 0.0   ;;  %s2473_s28 = smov [#allocation8]   ;;  %s2080_s10 = sshll.u32 %s3448_s8, 4  ;;  %s2081_s10 = int_to_ptr.hbm [resolvable:$true] %s2080_s10 }
  0x11   :  { %v108_v4 = vld [vmem:[#allocation2 + $0xf0] sm:$0xff]  ;;  %v110_v5 = vld [vmem:[#allocation2 + $0x100] sm:$0xff]  ;;  %172 = vmatpush.msra.mxu3 %v121_v8  ;;  %v115_v11 = vld [vmem:[#allocation2 + $0x128] sm:$0xff]  ;;  %s2078_s29 = sshll.u32 %s2473_s28, 4  ;;  %s2079_s29 = int_to_ptr.vmem [resolvable:$true] %s2078_s29 }
  0x12   :  { %153 = vmatpush.msra.mxu0 %v114_v2  ;;  %193 = vmatpush.msra.mxu2 %v116_v3  ;;  %v102_v6 = vld [vmem:[#allocation2 + $0xc0] sm:$0xff]  ;;  %v104_v7 = vld [vmem:[#allocation2 + $0xd0] sm:$0xff]  ;;  %v109_v12 = vld [vmem:[#allocation2 + $0xf8] sm:$0xff] }
  0x13   :  { %v96_v9 = vld [vmem:[#allocation2 + $0x90] sm:$0xff]  ;;  %v98_v10 = vld [vmem:[#allocation2 + $0xa0] sm:$0xff]  ;;  %173 = vmatpush.msra.mxu3 %v115_v11  ;;  %v103_v15 = vld [vmem:[#allocation2 + $0xc8] sm:$0xff] }
  0x14   :  { %154 = vmatpush.msra.mxu0 %v108_v4  ;;  %194 = vmatpush.msra.mxu2 %v110_v5  ;;  %v90_v13 = vld [vmem:[#allocation2 + $0x60] sm:$0xff]  ;;  %v92_v14 = vld [vmem:[#allocation2 + $0x70] sm:$0xff]  ;;  %v97_v18 = vld [vmem:[#allocation2 + $0x98] sm:$0xff] }
  0x15   :  { %v84_v16 = vld [vmem:[#allocation2 + $0x30] sm:$0xff]  ;;  %v86_v17 = vld [vmem:[#allocation2 + $0x40] sm:$0xff]  ;;  %174 = vmatpush.msra.mxu3 %v109_v12  ;;  %v125_v19 = vld [vmem:[#allocation2 + $0x178] sm:$0xff] }
  0x16   :  { %155 = vmatpush.msra.mxu0 %v102_v6  ;;  %195 = vmatpush.msra.mxu2 %v104_v7  ;;  %v78_v20 = vld [vmem:[#allocation2] sm:$0xff]  ;;  %v80_v21 = vld [vmem:[#allocation2 + $0x10] sm:$0xff]  ;;  %v119_v22 = vld [vmem:[#allocation2 + $0x148] sm:$0xff] }
  0x17   :  { %175 = vmatpush.msra.mxu3 %v103_v15  ;;  %252 = vmatpush.msra.mxu1 %v125_v19  ;;  %v77_v23 = vld [vmem:[%s3440_s0] sm:$0xff]  ;;  %v91_v24 = vld [vmem:[#allocation2 + $0x68] sm:$0xff]  ;;  %v124_v25 = vld [vmem:[#allocation2 + $0x170] sm:$0xff] }
  0x18   :  { %156 = vmatpush.msra.mxu0 %v96_v9  ;;  %196 = vmatpush.msra.mxu2 %v98_v10  ;;  %v113_v26 = vld [vmem:[#allocation2 + $0x118] sm:$0xff]  ;;  %v118_v28 = vld [vmem:[#allocation2 + $0x140] sm:$0xff]  ;;  %v107_v29 = vld [vmem:[#allocation2 + $0xe8] sm:$0xff] }
  0x19   :  { %176 = vmatpush.msra.mxu3 %v97_v18  ;;  %253 = vmatpush.msra.mxu1 %v119_v22  ;;  %v85_v27 = vld [vmem:[#allocation2 + $0x38] sm:$0xff]  ;;  %v79_v30 = vld [vmem:[#allocation2 + $0x8] sm:$0xff]  ;;  %v112_v31 = vld [vmem:[#allocation2 + $0x110] sm:$0xff] }
  0x1a   :  { %157 = vmatpush.msra.mxu0 %v90_v13  ;;  %197 = vmatpush.msra.mxu2 %v92_v14  ;;  %v123_v32 = vld [vmem:[#allocation2 + $0x168] sm:$0xff]  ;;  %v101_v33 = vld [vmem:[#allocation2 + $0xb8] sm:$0xff]  ;;  %v106_v34 = vld [vmem:[#allocation2 + $0xe0] sm:$0xff] }
  0x1b   :  { %177 = vmatpush.msra.mxu3 %v91_v24  ;;  %254 = vmatpush.msra.mxu1 %v113_v26  ;;  %v117_v35 = vld [vmem:[#allocation2 + $0x138] sm:$0xff]  ;;  %v95_v36 = vld [vmem:[#allocation2 + $0x88] sm:$0xff]  ;;  %v100_v37 = vld [vmem:[#allocation2 + $0xb0] sm:$0xff] }
  0x1c   :  { %158 = vmatpush.msra.mxu0 %v84_v16  ;;  %198 = vmatpush.msra.mxu2 %v86_v17  ;;  %v111_v38 = vld [vmem:[#allocation2 + $0x108] sm:$0xff]  ;;  %v89_v39 = vld [vmem:[#allocation2 + $0x58] sm:$0xff]  ;;  %v94_v40 = vld [vmem:[#allocation2 + $0x80] sm:$0xff] }
  0x1d   :  { %178 = vmatpush.msra.mxu3 %v85_v27  ;;  %255 = vmatpush.msra.mxu1 %v107_v29  ;;  %v105_v41 = vld [vmem:[#allocation2 + $0xd8] sm:$0xff]  ;;  %v88_v42 = vld [vmem:[#allocation2 + $0x50] sm:$0xff]  ;;  %v99_v43 = vld [vmem:[#allocation2 + $0xa8] sm:$0xff] }
  0x1e   :  { %159 = vmatpush.msra.mxu0 %v78_v20  ;;  %199 = vmatpush.msra.mxu2 %v80_v21  ;;  %v93_v44 = vld [vmem:[#allocation2 + $0x78] sm:$0xff]  ;;  %v87_v45 = vld [vmem:[#allocation2 + $0x48] sm:$0xff]  ;;  %v82_v47 = vld [vmem:[#allocation2 + $0x20] sm:$0xff] }
  0x1f   :  { %2091 = vmatmul.msk.f32.vlgmr.msra.gmra.mxu0 %vm140_vm0, %v77_v23  ;;  %2093 = vmatmul.msk.f32.vlgmr.msra.gmra.mxu2 %vm140_vm0, %v77_v23  ;;  %v81_v46 = vld [vmem:[#allocation2 + $0x18] sm:$0xff]  ;;  %v83_v48 = vld [vmem:[#allocation2 + $0x28] sm:$0xff]  ;;  %v2540_v49 = vld [vmem:[%s3442_s2] sm:$0x3f] }
  0x20   :  { %232 = vmatpush.msrb.mxu0 %v124_v25  ;;  %179 = vmatpush.msra.mxu3 %v79_v30  ;;  %v128_v50 = vperm.slane %v2540_v49, 0  ;;  %v2548_v53 = vld [vmem:[%s3443_s3] sm:$0xff]  ;;  %v130_v54 = vperm.slane %v2540_v49, 2  ;;  %v2557_v58 = vld [vmem:[#allocation5 + $0x1f0] sm:$0xff]  ;;  %v129_v60 = vperm.slane %v2540_v49, 1  ;;  %v131_v6 = vperm.slane %v2540_v49, 3 }
  0x21   :  { %256 = vmatpush.msra.mxu1 %v101_v33  ;;  %2092 = vmatmul.msk.f32.vlgmr.msra.gmra.mxu3 %vm140_vm0, %v77_v23  ;;  %3535 = vst [vmem:[#allocation13_spill] sm:$0xff] %v2557_v58  ;;  %v2561_v59 = vld [vmem:[#allocation5 + $0x1d0] sm:$0xff]  ;;  %v345_v1 = vld [vmem:[%s3444_s4] sm:$0xff]  ;;  %v346_v7 = vld [vmem:[%s3444_s4 + $0x8] sm:$0xff]  ;;  %v132_v33 = vperm.slane %v2540_v49, 4 }
  0x22   :  { %233 = vmatpush.msrb.mxu0 %v118_v28  ;;  %212 = vmatpush.msrb.mxu3 %v123_v32  ;;  %3536 = vst [vmem:[#allocation14_spill] sm:$0xff] %v2561_v59  ;;  %v2565_v62 = vld [vmem:[#allocation5 + $0x1b0] sm:$0xff]  ;;  %v2604_v12 = vld [vmem:[#allocation7 + $0x78] sm:$0xff]  ;;  %v2616_v16 = vld [vmem:[#allocation7 + $0x68] sm:$0xff] }
  0x23   :  { %257 = vmatpush.msra.mxu1 %v95_v36  ;;  %3537 = vst [vmem:[#allocation15_spill] sm:$0xff] %v2565_v62  ;;  %v2570_v0 = vld [vmem:[#allocation5 + $0x190] sm:$0xff]  ;;  %v2624_v18 = vld [vmem:[#allocation7 + $0x60] sm:$0xff]  ;;  %v2630_v20 = vld [vmem:[#allocation7 + $0x58] sm:$0xff] }
  0x24   :  { %234 = vmatpush.msrb.mxu0 %v112_v31  ;;  %213 = vmatpush.msrb.mxu3 %v117_v35  ;;  %3538 = vst [vmem:[#allocation16_spill] sm:$0xff] %v2570_v0  ;;  %v2579_v2 = vld [vmem:[#allocation5 + $0x170] sm:$0xff]  ;;  %v2642_v24 = vld [vmem:[#allocation7 + $0x48] sm:$0xff]  ;;  %v2646_v25 = vld [vmem:[#allocation7 + $0x40] sm:$0xff] }
  0x25   :  { %258 = vmatpush.msra.mxu1 %v89_v39  ;;  %3539 = vst [vmem:[#allocation17_spill] sm:$0xff] %v2579_v2  ;;  %v2583_v3 = vld [vmem:[#allocation5 + $0x150] sm:$0xff]  ;;  %v2651_v26 = vld [vmem:[#allocation7 + $0x38] sm:$0xff]  ;;  %v2657_v28 = vld [vmem:[#allocation7 + $0x28] sm:$0xff] }
  0x26   :  { %235 = vmatpush.msrb.mxu0 %v106_v34  ;;  %214 = vmatpush.msrb.mxu3 %v111_v38  ;;  %3540 = vst [vmem:[#allocation18_spill] sm:$0xff] %v2583_v3  ;;  %v2586_v4 = vld [vmem:[#allocation5 + $0x130] sm:$0xff]  ;;  %v2661_v29 = vld [vmem:[#allocation7 + $0x20] sm:$0xff]  ;;  %v2664_v30 = vld [vmem:[#allocation7 + $0x18] sm:$0xff]  ;;  %v133_v34 = vperm.slane %v2540_v49, 5 }
  0x27   :  { %259 = vmatpush.msra.mxu1 %v83_v48  ;;  %3541 = vst [vmem:[#allocation19_spill] sm:$0xff] %v2586_v4  ;;  %v2589_v5 = vld [vmem:[#allocation5 + $0x110] sm:$0xff]  ;;  %v2670_v32 = vld [vmem:[#allocation7 + $0x8] sm:$0xff]  ;;  %v2679_v39 = vld [vmem:[#allocation5 + $0x1e0] sm:$0xff] }
  0x28   :  { %236 = vmatpush.msrb.mxu0 %v100_v37  ;;  %215 = vmatpush.msrb.mxu3 %v105_v41  ;;  %3542 = vst [vmem:[#allocation20_spill] sm:$0xff] %v2589_v5  ;;  %v2596_v8 = vld [vmem:[#allocation5 + $0xf0] sm:$0xff]  ;;  %v2685_v41 = vld [vmem:[#allocation5 + $0x1c0] sm:$0xff]  ;;  %v2709_v48 = vld [vmem:[#allocation5 + $0x1f8] sm:$0xff] }
  0x29   :  { %2096 = vmatmul.msk.f32.vlgmr.msra.gmra.mxu1 %vm140_vm0, %v77_v23  ;;  %3543 = vst [vmem:[#allocation21_spill] sm:$0xff] %v2596_v8  ;;  %v2600_v10 = vld [vmem:[#allocation5 + $0xd0] sm:$0xff]  ;;  %v2712_v49 = vld [vmem:[#allocation5 + $0x160] sm:$0xff] }
  0x2a   :  { %237 = vmatpush.msrb.mxu0 %v94_v40  ;;  %216 = vmatpush.msrb.mxu3 %v99_v43  ;;  %3544 = vst [vmem:[#allocation22_spill] sm:$0xff] %v2600_v10  ;;  %v2607_v13 = vld [vmem:[#allocation5 + $0xb0] sm:$0xff]  ;;  %v2681_v40 = vld [vmem:[#allocation5 + $0x1e8] sm:$0xff]  ;;  %v2697_v43 = vld [vmem:[#allocation5 + $0x1a0] sm:$0xff] }
  0x2b   :  { %3546 = vst [vmem:[#allocation24_spill] sm:$0xff] %v2607_v13  ;;  %v2610_v14 = vld [vmem:[#allocation7 + $0x70] sm:$0xff] }
  0x2c   :  { %238 = vmatpush.msrb.mxu0 %v88_v42  ;;  %217 = vmatpush.msrb.mxu3 %v93_v44  ;;  %v2614_v15 = vld [vmem:[#allocation5 + $0x90] sm:$0xff]  ;;  %3552 = vst [vmem:[#allocation30_spill] sm:$0xff] %v2679_v39  ;;  %v2687_v42 = vld [vmem:[#allocation5 + $0x1c8] sm:$0xff] }
  0x2d   :  { %3547 = vst [vmem:[#allocation25_spill] sm:$0xff] %v2614_v15  ;;  %v2622_v17 = vld [vmem:[#allocation5 + $0x70] sm:$0xff]  ;;  %v2699_v44 = vld [vmem:[#allocation5 + $0x1a8] sm:$0xff] }
  0x2e   :  { %218 = vmatpush.msrb.mxu3 %v87_v45  ;;  %239 = vmatpush.msrb.mxu0 %v82_v47  ;;  %3548 = vst [vmem:[#allocation26_spill] sm:$0xff] %v2622_v17  ;;  %v2628_v19 = vld [vmem:[#allocation5 + $0x50] sm:$0xff]  ;;  %v2701_v45 = vld [vmem:[#allocation7] sm:$0xff]  ;;  %v2707_v47 = vld [vmem:[#allocation5 + $0x188] sm:$0xff] }
  0x2f   :  { %2095 = vmatmul.msk.f32.vlgmr.msrb.gmra.mxu0 %vm140_vm0, %v77_v23  ;;  %3549 = vst [vmem:[#allocation27_spill] sm:$0xff] %v2628_v19  ;;  %v2634_v21 = vld [vmem:[#allocation5 + $0x30] sm:$0xff] }
  0x30   :  { %219 = vmatpush.msrb.mxu3 %v81_v46  ;;  %3550 = vst [vmem:[#allocation28_spill] sm:$0xff] %v2634_v21  ;;  %v2636_v22 = vld [vmem:[#allocation7 + $0x50] sm:$0xff]  ;;  %v2705_v46 = vld [vmem:[#allocation5 + $0x180] sm:$0xff] }
  0x31   :  { %2094 = vmatmul.msk.f32.vlgmr.msrb.gmra.mxu3 %vm140_vm0, %v77_v23  ;;  %v2640_v23 = vld [vmem:[#allocation5 + $0x10] sm:$0xff]  ;;  %3553 = vst [vmem:[#allocation31_spill] sm:$0xff] %v2681_v40 }
  0x32   :  { %3551 = vst [vmem:[#allocation29_spill] sm:$0xff] %v2640_v23  ;;  %v2654_v27 = vld [vmem:[#allocation7 + $0x30] sm:$0xff] }
  0x33   :  { %v2667_v31 = vld [vmem:[#allocation7 + $0x10] sm:$0xff]  ;;  %3554 = vst [vmem:[#allocation32_spill] sm:$0xff] %v2685_v41 }
  0x34   :  { %3555 = vst [vmem:[#allocation33_spill] sm:$0xff] %v2687_v42 }
  0x35   :  { %3556 = vst [vmem:[#allocation34_spill] sm:$0xff] %v2697_v43 }
  0x36   :  { %3557 = vst [vmem:[#allocation35_spill] sm:$0xff] %v2699_v44 }
  0x37   :  { %3558 = vst [vmem:[#allocation36_spill] sm:$0xff] %v2705_v46 }
  0x38   :  { %3559 = vst [vmem:[#allocation37_spill] sm:$0xff] %v2707_v47 }
  0x39   :  { %3560 = vst [vmem:[#allocation38_spill] sm:$0xff] %v2712_v49 }
  0x9c   :  { %v161_v51 = vpop.f32.mrf.mxu0 }
  0x9d   :  { %v2543_v52 = vadd.f32 %v161_v51, %v128_v50  ;;  %v2714_v50 = vld [vmem:[#allocation5 + $0x168] sm:$0xff]  ;;  %v2718_v51 = vld [vmem:[#allocation5 + $0x1d8] sm:$0xff] }
  0x9e   :  { %3561 = vst [vmem:[#allocation39_spill] sm:$0xff] %v2714_v50 }
  0x9f   :  { %3534 = vst [vmem:[#allocation12_spill] sm:$0xff] %v2543_v52  ;;  %367 = vmatpush.msrb.mxu2 %v2543_v52 }
  0xa0   :  { %2097 = vmatmul.msk.f32.vlgmr.msrb.gmra.mxu2 %vm348_vm1, %v2548_v53 }
  0xa2   :  { %v201_v55 = vpop.f32.mrf.mxu2 }
  0xa3   :  { %v2554_v56 = vadd.f32 %v201_v55, %v130_v54  ;;  %v2723_v54 = vld [vmem:[#allocation5 + $0x148] sm:$0xff]  ;;  %v2727_v55 = vld [vmem:[#allocation5 + $0x1b8] sm:$0xff] }
  0xa4   :  { %v181_v61 = vpop.f32.mrf.mxu3  ;;  %3563 = vst [vmem:[#allocation41_spill] sm:$0xff] %v2723_v54 }
  0xa5   :  { %407 = vmatpush.msra.mxu2 %v2554_v56  ;;  %v2567_v63 = vadd.f32 %v181_v61, %v129_v60  ;;  %v2735_v60 = vld [vmem:[#allocation5 + $0x128] sm:$0xff]  ;;  %v2737_v61 = vld [vmem:[#allocation5 + $0x198] sm:$0xff] }
  0xa6   :  { %v261_v36 = vpop.f32.mrf.mxu1  ;;  %3565 = vst [vmem:[#allocation43_spill] sm:$0xff] %v2735_v60 }
  0xa7   :  { %493 = vmatpush.msrb.mxu2 %v2472_v57  ;;  %387 = vmatpush.msra.mxu3 %v2567_v63  ;;  %v2677_v38 = vadd.f32 %v261_v36, %v133_v34  ;;  %v2733_v57 = vld [vmem:[#allocation5 + $0x120] sm:$0xff]  ;;  %v2754_v34 = vld [vmem:[#allocation5 + $0x158] sm:$0xff]  ;;  %v2759_v36 = vld [vmem:[#allocation5 + $0xc8] sm:$0xff] }
  0xa8   :  { %2099 = vmatmul.msk.f32.vlgmr.msra.gmra.mxu2 %vm348_vm1, %v2548_v53  ;;  %2098 = vmatmul.msk.f32.vlgmr.msra.gmra.mxu3 %vm348_vm1, %v2548_v53  ;;  %3564 = vst [vmem:[#allocation42_spill] sm:$0xff] %v2733_v57 }
  0xa9   :  { %608 = vmatpush.msra.mxu2 %v2557_v58  ;;  %467 = vmatpush.msrb.mxu1 %v2677_v38  ;;  %3571 = vst [vmem:[#allocation49_spill] sm:$0xff] %v2759_v36 }
  0xaa   :  { %2102 = vmatmul.msk.f32.vlgmr.msrb.gmra.mxu1 %vm348_vm1, %v2548_v53 }
  0xab   :  { %609 = vmatpush.msra.mxu2 %v2561_v59  ;;  %588 = vmatpush.msra.mxu1 %v2681_v40 }
  0xac   :  { %v241_v35 = vpop.f32.mrf.mxu0 }
  0xad   :  { %610 = vmatpush.msra.mxu2 %v2565_v62  ;;  %v2675_v37 = vadd.f32 %v241_v35, %v132_v33  ;;  %589 = vmatpush.msra.mxu1 %v2687_v42  ;;  %v2750_v33 = vld [vmem:[#allocation5 + $0xe8] sm:$0xff]  ;;  %v2757_v35 = vld [vmem:[#allocation5 + $0xc0] sm:$0xff] }
  0xae   :  { %3569 = vst [vmem:[#allocation47_spill] sm:$0xff] %v2750_v33 }
  0xaf   :  { %611 = vmatpush.msra.mxu2 %v2570_v0  ;;  %447 = vmatpush.msra.mxu0 %v2675_v37  ;;  %3570 = vst [vmem:[#allocation48_spill] sm:$0xff] %v2757_v35 }
  0xb0   :  { %2103 = vmatmul.msk.f32.vlgmr.msrb.gmra.mxu2 %vm348_vm1, %v345_v1  ;;  %2101 = vmatmul.msk.f32.vlgmr.msra.gmra.mxu0 %vm348_vm1, %v2548_v53  ;;  %v2741_v1 = vld [vmem:[#allocation5 + $0x100] sm:$0xff] }
  0xb1   :  { %612 = vmatpush.msra.mxu2 %v2579_v2  ;;  %568 = vmatpush.msrb.mxu0 %v2679_v39  ;;  %3566 = vst [vmem:[#allocation44_spill] sm:$0xff] %v2741_v1 }
  0xb2   :  { %590 = vmatpush.msra.mxu1 %v2699_v44 }
  0xb3   :  { %613 = vmatpush.msra.mxu2 %v2583_v3  ;;  %569 = vmatpush.msrb.mxu0 %v2685_v41  ;;  %v2825_v41 = vld [vmem:[#allocation5 + $0x38] sm:$0xff] }
  0xb4   :  { %v221_v9 = vpop.f32.mrf.mxu3  ;;  %591 = vmatpush.msra.mxu1 %v2707_v47  ;;  %3587 = vst [vmem:[#allocation65_spill] sm:$0xff] %v2825_v41 }
  0xb5   :  { %614 = vmatpush.msra.mxu2 %v2586_v4  ;;  %v2602_v11 = vadd.f32 %v221_v9, %v131_v6  ;;  %570 = vmatpush.msrb.mxu0 %v2697_v43  ;;  %v2743_v6 = vld [vmem:[#allocation5 + $0x108] sm:$0xff]  ;;  %v2748_v9 = vld [vmem:[#allocation5 + $0xe0] sm:$0xff] }
  0xb6   :  { %592 = vmatpush.msra.mxu1 %v2714_v50  ;;  %3567 = vst [vmem:[#allocation45_spill] sm:$0xff] %v2743_v6  ;;  %v2815_v43 = vld [vmem:[#allocation5 + $0x8] sm:$0xff] }
  0xb7   :  { %615 = vmatpush.msra.mxu2 %v2589_v5  ;;  %3545 = vst [vmem:[#allocation23_spill] sm:$0xff] %v2602_v11  ;;  %427 = vmatpush.msrb.mxu3 %v2602_v11 }
  0xb8   :  { %2104 = vmatmul.msk.f32.gmra.mxu2 %vm348_vm1, %v346_v7  ;;  %2100 = vmatmul.msk.f32.vlgmr.msrb.gmra.mxu3 %vm348_vm1, %v2548_v53  ;;  %v2721_v53 = vld [vmem:[#allocation5 + $0x140] sm:$0xff]  ;;  %v2745_v7 = vld [vmem:[#allocation5 + $0x178] sm:$0xff]  ;;  %3568 = vst [vmem:[#allocation46_spill] sm:$0xff] %v2748_v9 }
  0xb9   :  { %616 = vmatpush.msra.mxu2 %v2596_v8  ;;  %501 = vmatpush.msra.mxu3 %v2604_v12  ;;  %3562 = vst [vmem:[#allocation40_spill] sm:$0xff] %v2721_v53 }
  0xba   :  { %571 = vmatpush.msrb.mxu0 %v2705_v46  ;;  %593 = vmatpush.msra.mxu1 %v2723_v54  ;;  %v2807_v46 = vld [vmem:[#allocation5 + $0x28] sm:$0xff]  ;;  %3584 = vst [vmem:[#allocation62_spill] sm:$0xff] %v2815_v43 }
  0xbb   :  { %617 = vmatpush.msra.mxu2 %v2600_v10  ;;  %502 = vmatpush.msra.mxu3 %v2610_v14  ;;  %3581 = vst [vmem:[#allocation59_spill] sm:$0xff] %v2807_v46  ;;  %v2817_v10 = vld [vmem:[#allocation5 + $0x78] sm:$0xff] }
  0xbc   :  { %572 = vmatpush.msrb.mxu0 %v2712_v49  ;;  %594 = vmatpush.msra.mxu1 %v2735_v60  ;;  %v2795_v49 = vld [vmem:[#allocation5 + $0x48] sm:$0xff]  ;;  %3585 = vst [vmem:[#allocation63_spill] sm:$0xff] %v2817_v10 }
  0xbd   :  { %618 = vmatpush.msra.mxu2 %v2607_v13  ;;  %503 = vmatpush.msra.mxu3 %v2616_v16  ;;  %3579 = vst [vmem:[#allocation57_spill] sm:$0xff] %v2795_v49  ;;  %v2809_v13 = vld [vmem:[#allocation5 + $0x98] sm:$0xff] }
  0xbe   :  { %573 = vmatpush.msrb.mxu0 %v2721_v53  ;;  %595 = vmatpush.msra.mxu1 %v2743_v6  ;;  %v2786_v53 = vld [vmem:[#allocation5 + $0x68] sm:$0xff]  ;;  %3582 = vst [vmem:[#allocation60_spill] sm:$0xff] %v2809_v13 }
  0xbf   :  { %619 = vmatpush.msra.mxu2 %v2614_v15  ;;  %504 = vmatpush.msra.mxu3 %v2624_v18  ;;  %3577 = vst [vmem:[#allocation55_spill] sm:$0xff] %v2786_v53  ;;  %v2799_v15 = vld [vmem:[#allocation5 + $0xb8] sm:$0xff] }
  0xc0   :  { %574 = vmatpush.msrb.mxu0 %v2733_v57  ;;  %596 = vmatpush.msra.mxu1 %v2750_v33  ;;  %v2779_v57 = vld [vmem:[#allocation5 + $0x88] sm:$0xff] }
  0xc1   :  { %620 = vmatpush.msra.mxu2 %v2622_v17  ;;  %505 = vmatpush.msra.mxu3 %v2630_v20  ;;  %3575 = vst [vmem:[#allocation53_spill] sm:$0xff] %v2779_v57  ;;  %v2790_v17 = vld [vmem:[#allocation5 + $0xd8] sm:$0xff] }
  0xc2   :  { %575 = vmatpush.msrb.mxu0 %v2741_v1  ;;  %597 = vmatpush.msra.mxu1 %v2759_v36  ;;  %v2771_v1 = vld [vmem:[#allocation5 + $0xa8] sm:$0xff] }
  0xc3   :  { %621 = vmatpush.msra.mxu2 %v2628_v19  ;;  %506 = vmatpush.msra.mxu3 %v2636_v22  ;;  %3573 = vst [vmem:[#allocation51_spill] sm:$0xff] %v2771_v1  ;;  %v2781_v19 = vld [vmem:[#allocation5 + $0xf8] sm:$0xff] }
  0xc4   :  { %576 = vmatpush.msrb.mxu0 %v2748_v9  ;;  %598 = vmatpush.msra.mxu1 %v2771_v1  ;;  %v2777_v9 = vld [vmem:[#allocation5 + $0x80] sm:$0xff] }
  0xc5   :  { %622 = vmatpush.msra.mxu2 %v2634_v21  ;;  %507 = vmatpush.msra.mxu3 %v2642_v24  ;;  %v2773_v21 = vld [vmem:[#allocation5 + $0x118] sm:$0xff]  ;;  %3574 = vst [vmem:[#allocation52_spill] sm:$0xff] %v2777_v9 }
  0xc6   :  { %577 = vmatpush.msrb.mxu0 %v2757_v35  ;;  %v2784_v35 = vld [vmem:[#allocation5 + $0x60] sm:$0xff]  ;;  %599 = vmatpush.msra.mxu1 %v2779_v57 }
  0xc7   :  { %623 = vmatpush.msra.mxu2 %v2640_v23  ;;  %508 = vmatpush.msra.mxu3 %v2646_v25  ;;  %v2769_v23 = vld [vmem:[#allocation5 + $0xa0] sm:$0xff]  ;;  %3576 = vst [vmem:[#allocation54_spill] sm:$0xff] %v2784_v35 }
  0xc8   :  { %3572 = vst [vmem:[#allocation50_spill] sm:$0xff] %v2769_v23  ;;  %578 = vmatpush.msrb.mxu0 %v2769_v23  ;;  %v2793_v23 = vld [vmem:[#allocation5 + $0x40] sm:$0xff]  ;;  %600 = vmatpush.msra.mxu1 %v2786_v53 }
  0xc9   :  { %786 = vmatpush.msrb.mxu2 %v2543_v52  ;;  %509 = vmatpush.msra.mxu3 %v2651_v26  ;;  %v2763_v52 = vld [vmem:[#allocation5 + $0x138] sm:$0xff]  ;;  %3578 = vst [vmem:[#allocation56_spill] sm:$0xff] %v2793_v23 }
  0xca   :  { %579 = vmatpush.msrb.mxu0 %v2777_v9  ;;  %601 = vmatpush.msra.mxu1 %v2795_v49  ;;  %v2805_v9 = vld [vmem:[#allocation5 + $0x20] sm:$0xff] }
  0xcb   :  { %510 = vmatpush.msra.mxu3 %v2654_v27  ;;  %3580 = vst [vmem:[#allocation58_spill] sm:$0xff] %v2805_v9 }
  0xcc   :  { %580 = vmatpush.msrb.mxu0 %v2784_v35  ;;  %602 = vmatpush.msra.mxu1 %v2807_v46  ;;  %v2813_v35 = vld [vmem:[#allocation5] sm:$0xff] }
  0xcd   :  { %511 = vmatpush.msra.mxu3 %v2657_v28  ;;  %3583 = vst [vmem:[#allocation61_spill] sm:$0xff] %v2813_v35 }
  0xce   :  { %581 = vmatpush.msrb.mxu0 %v2793_v23  ;;  %603 = vmatpush.msra.mxu1 %v2815_v43  ;;  %v2823_v23 = vld [vmem:[#allocation5 + $0x58] sm:$0xff] }
  0xcf   :  { %512 = vmatpush.msra.mxu3 %v2661_v29  ;;  %3586 = vst [vmem:[#allocation64_spill] sm:$0xff] %v2823_v23 }
  0xd0   :  { %582 = vmatpush.msrb.mxu0 %v2805_v9  ;;  %v2828_v9 = vld [vmem:[#allocation5 + $0x18] sm:$0xff] }
  0xd1   :  { %513 = vmatpush.msra.mxu3 %v2664_v30  ;;  %3588 = vst [vmem:[#allocation66_spill] sm:$0xff] %v2828_v9 }
  0xd2   :  { %583 = vmatpush.msrb.mxu0 %v2813_v35 }
  0xd3   :  { %514 = vmatpush.msra.mxu3 %v2667_v31 }
  0xd5   :  { %515 = vmatpush.msra.mxu3 %v2670_v32 }
  0xd7   :  { %516 = vmatpush.msra.mxu3 %v2701_v45 }
  0xd9   :  { %628 = vmatpush.msrb.mxu3 %v2709_v48 }
  0xdb   :  { %629 = vmatpush.msrb.mxu3 %v2718_v51 }
  0xdd   :  { %630 = vmatpush.msrb.mxu3 %v2727_v55 }
  0xdf   :  { %631 = vmatpush.msrb.mxu3 %v2737_v61 }
  0xe1   :  { %632 = vmatpush.msrb.mxu3 %v2745_v7 }
  0xe3   :  { %633 = vmatpush.msrb.mxu3 %v2754_v34 }
  0xe5   :  { %634 = vmatpush.msrb.mxu3 %v2763_v52 }
  0xe7   :  { %635 = vmatpush.msrb.mxu3 %v2773_v21 }
  0xe9   :  { %636 = vmatpush.msrb.mxu3 %v2781_v19 }
  0xeb   :  { %637 = vmatpush.msrb.mxu3 %v2790_v17 }
  0xed   :  { %638 = vmatpush.msrb.mxu3 %v2799_v15 }
  0xef   :  { %639 = vmatpush.msrb.mxu3 %v2809_v13 }
  0xf1   :  { %640 = vmatpush.msrb.mxu3 %v2817_v10 }
  0xf3   :  { %641 = vmatpush.msrb.mxu3 %v2823_v23 }
  0xf5   :  { %642 = vmatpush.msrb.mxu3 %v2825_v41 }
  0xf7   :  { %643 = vmatpush.msrb.mxu3 %v2828_v9 }
 0x123   :  { %v2830_v8 = vpop.f32.mrf.mxu2 }
 0x12b   :  { %v409_v39 = vpop.f32.mrf.mxu2 }
 0x133   :  { %v2834_v35 = vpop.f32.mrf.mxu2 }
 0x134   :  { %517 = vmatmul.f32.vlgmr.msra.gmra.mxu3 %v2834_v35 }
 0x135   :  { %1030 = vmatpush.msra.mxu3 %v2681_v40 }
 0x137   :  { %1031 = vmatpush.msra.mxu3 %v2687_v42 }
 0x139   :  { %1032 = vmatpush.msra.mxu3 %v2699_v44 }
 0x13b   :  { %v2840_v5 = vpop.f32.mrf.mxu2  ;;  %1033 = vmatpush.msra.mxu3 %v2707_v47 }
 0x13c   :  { %v567_v4 = vadd.f32 %v2840_v5, %v2834_v35  ;;  %520 = vmatmul.f32.gmra.mxu3 %v2840_v5 }
 0x13d   :  { %1034 = vmatpush.msra.mxu3 %v2714_v50 }
 0x13e   :  { %584 = vmatmul.f32.vlgmr.msrb.gmra.mxu0 %v567_v4  ;;  %604 = vmatmul.f32.vlgmr.msra.gmra.mxu1 %v567_v4 }
 0x13f   :  { %624 = vmatmul.f32.vlgmr.msra.gmra.mxu2 %v567_v4  ;;  %1035 = vmatpush.msra.mxu3 %v2723_v54 }
 0x140   :  { %846 = vmatpush.msra.mxu2 %v2602_v11 }
 0x141   :  { %1036 = vmatpush.msra.mxu3 %v2735_v60  ;;  %v389_v60 = vpop.f32.mrf.mxu3 }
 0x143   :  { %1037 = vmatpush.msra.mxu3 %v2743_v6  ;;  %v449_v6 = vpop.f32.mrf.mxu0 }
 0x144   :  { %644 = vmatmul.f32.vlgmr.msrb.gmra.mxu3 %v567_v4  ;;  %v469_v4 = vpop.f32.mrf.mxu1 }
 0x145   :  { %1038 = vmatpush.msra.mxu3 %v2750_v33 }
 0x147   :  { %1039 = vmatpush.msra.mxu3 %v2759_v36 }
 0x149   :  { %1040 = vmatpush.msra.mxu3 %v2771_v1  ;;  %v429_v11 = vpop.f32.mrf.mxu3 }
 0x14b   :  { %1041 = vmatpush.msra.mxu3 %v2779_v57 }
 0x14d   :  { %1042 = vmatpush.msra.mxu3 %v2786_v53 }
 0x14f   :  { %1043 = vmatpush.msra.mxu3 %v2795_v49 }
 0x151   :  { %1044 = vmatpush.msra.mxu3 %v2807_v46 }
 0x153   :  { %1045 = vmatpush.msra.mxu3 %v2815_v43 }
 0x1b7   :  { %v518_v54 = vpop.f32.mrf.mxu3 }
 0x1b8   :  { %v524_v33 = vadd.f32 %v518_v54, %v469_v4 }
 0x1ba   :  { %v2105_v50 = vmul.f32 -1.442695, %v524_v33 }
 0x1bb   :  { %v585_v36 = vpop.f32.mrf.mxu0  ;;  %v605_v47 = vpop.f32.mrf.mxu1 }
 0x1bc   :  { %2185 = vpow2.f32 %v2105_v50  ;;  %v648_v1 = vadd.f32 %v585_v36, %v389_v60  ;;  %v649_v57 = vadd.f32 %v605_v47, %v409_v39 }
 0x1be   :  { %v2107_v44 = vmul.f32 -1.442695, %v648_v1  ;;  %v2108_v53 = vmul.f32 -1.442695, %v649_v57 }
 0x1bf   :  { %v521_v42 = vpop.f32.mrf.mxu3 }
 0x1c0   :  { %2187 = vpow2.f32 %v2107_v44  ;;  %v525_v49 = vadd.f32 %v521_v42, %v469_v4 }
 0x1c1   :  { %2189 = vpow2.f32 %v2108_v53 }
 0x1c2   :  { %v2186_v46 = vpop.eup %2185  ;;  %v2106_v43 = vmul.f32 -1.442695, %v525_v49  ;;  %v625_v53 = vpop.f32.mrf.mxu2 }
 0x1c3   :  { %v532_v40 = vadd.f32 1.0, %v2186_v46  ;;  %v650_v36 = vadd.f32 %v625_v53, %v429_v11 }
 0x1c4   :  { %2191 = vpow2.f32 %v2106_v43 }
 0x1c5   :  { %2193 = vrcp.f32 %v532_v40  ;;  %vm539_vm3 = vweird.f32 %v532_v40 }
 0x1c6   :  { %v2188_v3 = vpop.eup %2187 }
 0x1c7   :  { %v2190_v2 = vpop.eup %2189  ;;  %v655_v54 = vadd.f32 1.0, %v2188_v3  ;;  %v645_v33 = vpop.f32.mrf.mxu3 }
 0x1c8   :  { %v651_v0 = vadd.f32 %v645_v33, %v449_v6  ;;  %v2859_v60 = vadd.f32 1.0, %v2190_v2 }
 0x1c9   :  { %2195 = vrcp.f32 %v655_v54  ;;  %vm661_vm4 = vweird.f32 %v655_v54  ;;  %v667_v62 = vand.u32 2147483648, %v655_v54 }
 0x1ca   :  { %v2192_v50 = vpop.eup %2191  ;;  %v2109_v39 = vmul.f32 -1.442695, %v651_v0 }
 0x1cb   :  { %v2194_v47 = vpop.eup %2193  ;;  %v533_v57 = vadd.f32 1.0, %v2192_v50  ;;  %v668_v10 = vor.u32 1.1754944e-38, %v667_v62 }
 0x1cc   :  { %v535_v44 = vmul.f32 %v2194_v47, %v532_v40  ;;  %2197 = vpow2.f32 %v2109_v39  ;;  %vm540_vm2 = vweird.f32 %v2194_v47  ;;  %v2869_v39 = vld [vmem:[%s3443_s3 + $0x8] sm:$0xff] }
 0x1cd   :  { %2199 = vrcp.f32 %v533_v57  ;;  %2116 = vmatmul.msk.f32.vlgmr.msrb.gmra.mxu2 %vm348_vm1, %v2869_v39  ;;  %vm2874_vm6 = vmor %vm539_vm3, %vm540_vm2  ;;  %v558_v58 = vand.u32 2147483647, %v533_v57  ;;  %vm554_vm9 = vweird.f32 %v533_v57  ;;  %vm680_vm3 = vweird.f32 %v2859_v60 }
 0x1ce   :  { %v536_v42 = vsub.f32 1.0, %v535_v44  ;;  %2201 = vrcp.f32 %v2859_v60  ;;  %v545_v44 = vand.u32 2147483648, %v532_v40 }
 0x1cf   :  { %v2196_v43 = vpop.eup %2195  ;;  %vm559_vm13 = vcmp.eq.f32.partialorder %v558_v58, 8.507059e+37 }
 0x1d0   :  { %v537_v46 = vmul.f32 %v2194_v47, %v536_v42  ;;  %v657_v49 = vmul.f32 %v2196_v43, %v655_v54  ;;  %v543_v42 = vand.u32 2147483647, %v532_v40  ;;  %vm662_vm5 = vweird.f32 %v2196_v43 }
 0x1d1   :  { %vm2882_vm8 = vmor %vm661_vm4, %vm662_vm5 }
 0x1d2   :  { %v2198_v3 = vpop.eup %2197  ;;  %v658_v1 = vsub.f32 1.0, %v657_v49  ;;  %v538_v50 = vadd.f32 %v2194_v47, %v537_v46  ;;  %vm544_vm10 = vcmp.eq.f32.partialorder %v543_v42, 8.507059e+37 }
 0x1d3   :  { %v2200_v6 = vpop.eup %2199  ;;  %v2862_v4 = vadd.f32 1.0, %v2198_v3  ;;  %v560_v3 = vand.u32 2147483648, %v533_v57 }
 0x1d4   :  { %v2864_v2 = vpop.eup %2201  ;;  %v550_v0 = vmul.f32 %v2200_v6, %v533_v57  ;;  %v659_v33 = vmul.f32 %v2196_v43, %v658_v1  ;;  %v665_v1 = vand.u32 2147483647, %v655_v54  ;;  %vm555_vm7 = vweird.f32 %v2200_v6 }
 0x1d5   :  { %2203 = vrcp.f32 %v2862_v4  ;;  %v676_v46 = vmul.f32 %v2864_v2, %v2859_v60  ;;  %v542_v40 = vsel %vm2874_vm6, %v2194_v47, %v538_v50  ;;  %vm556_vm11 = vmor %vm554_vm9, %vm555_vm7  ;;  %2119 = vmatmul.msk.f32.vlgmr.msra.gmra.mxu2 %vm348_vm1, %v2869_v39  ;;  %v706_v62 = vand.u32 2147483648, %v2862_v4 }
 0x1d6   :  { %v551_v11 = vsub.f32 1.0, %v550_v0  ;;  %v660_v49 = vadd.f32 %v2196_v43, %v659_v33  ;;  %v546_v0 = vor.u32 1.1754944e-38, %v545_v44  ;;  %2205 = vtanh.f32 %v650_v36 }
 0x1d7   :  { %v677_v54 = vsub.f32 1.0, %v676_v46  ;;  %vm666_vm12 = vcmp.eq.f32.partialorder %v665_v1, 8.507059e+37  ;;  %v704_v58 = vand.u32 2147483647, %v2862_v4  ;;  %vm700_vm15 = vweird.f32 %v2862_v4 }
 0x1d8   :  { %v552_v59 = vmul.f32 %v2200_v6, %v551_v11  ;;  %v664_v9 = vsel %vm2882_vm8, %v2196_v43, %v660_v49  ;;  %v561_v11 = vor.u32 1.1754944e-38, %v560_v3  ;;  %v547_v53 = vsel %vm544_vm10, %v546_v0, %v542_v40 }
 0x1d9   :  { %v669_v44 = vsel %vm666_vm12, %v668_v10, %v664_v9  ;;  %v564_v43 = vmul.f32 %v547_v53, %v2834_v35  ;;  %v678_v42 = vmul.f32 %v2864_v2, %v677_v54  ;;  %vm681_vm0 = vweird.f32 %v2864_v2 }
 0x1da   :  { %v553_v41 = vadd.f32 %v2200_v6, %v552_v59  ;;  %vm705_vm4 = vcmp.eq.f32.partialorder %v704_v58, 8.507059e+37  ;;  %vm682_vm5 = vmor %vm680_vm3, %vm681_vm0  ;;  %v3620_v58 = vld [vmem:[#allocation44_spill] sm:$0xff] }
 0x1db   :  { %v2204_v23 = vpop.eup %2203 }
 0x1dc   :  { %v696_v47 = vmul.f32 %v2204_v23, %v2862_v4  ;;  %v557_v50 = vsel %vm556_vm11, %v2200_v6, %v553_v41  ;;  %v2206_v36 = vpop.eup %2205  ;;  %vm701_vm14 = vweird.f32 %v2204_v23  ;;  %v347_v41 = vld [vmem:[%s3445_s5] sm:$0xff]  ;;  %v707_v6 = vor.u32 1.1754944e-38, %v706_v62  ;;  %v3616_v62 = vld [vmem:[#allocation40_spill] sm:$0xff] }
 0x1dd   :  { %v562_v13 = vsel %vm559_vm13, %v561_v11, %v557_v50  ;;  %v710_v49 = vmul.f32 %v2206_v36, %v669_v44  ;;  %vm702_vm2 = vmor %vm700_vm15, %vm701_vm14  ;;  %v684_v4 = vand.u32 2147483647, %v2859_v60  ;;  %v3609_v50 = vld [vmem:[#allocation22_spill] sm:$0xff] }
 0x1de   :  { %v697_v57 = vsub.f32 1.0, %v696_v47  ;;  %v565_v59 = vmul.f32 %v562_v13, %v2840_v5  ;;  %v679_v5 = vadd.f32 %v2864_v2, %v678_v42  ;;  %v686_v13 = vand.u32 2147483648, %v2859_v60  ;;  %v3610_v44 = vld [vmem:[#allocation34_spill] sm:$0xff] }
 0x1df   :  { %vm685_vm6 = vcmp.eq.f32.partialorder %v684_v4, 8.507059e+37  ;;  %v3614_v36 = vld [vmem:[#allocation38_spill] sm:$0xff]  ;;  %v3628_v4 = vld [vmem:[#allocation56_spill] sm:$0xff] }
 0x1e0   :  { %v698_v46 = vmul.f32 %v2204_v23, %v697_v57  ;;  %v566_v3 = vadd.f32 %v565_v59, %v564_v43  ;;  %v683_v40 = vsel %vm682_vm5, %v2864_v2, %v679_v5  ;;  %v687_v0 = vor.u32 1.1754944e-38, %v686_v13  ;;  %v3607_v2 = vld [vmem:[#allocation21_spill] sm:$0xff]  ;;  %v3611_v57 = vld [vmem:[#allocation24_spill] sm:$0xff]  ;;  %v3615_v42 = vld [vmem:[#allocation26_spill] sm:$0xff] }
 0x1e1   :  { %v3612_v43 = vld [vmem:[#allocation36_spill] sm:$0xff]  ;;  %v3613_v59 = vld [vmem:[#allocation25_spill] sm:$0xff]  ;;  %v3625_v13 = vld [vmem:[#allocation50_spill] sm:$0xff] }
 0x1e2   :  { %v711_v10 = vadd.f32 %v710_v49, %v566_v3  ;;  %v699_v9 = vadd.f32 %v2204_v23, %v698_v46  ;;  %v688_v54 = vsel %vm685_vm6, %v687_v0, %v683_v40  ;;  %v3617_v49 = vld [vmem:[#allocation27_spill] sm:$0xff]  ;;  %v3618_v46 = vld [vmem:[#allocation42_spill] sm:$0xff]  ;;  %v3619_v3 = vld [vmem:[#allocation28_spill] sm:$0xff] }
 0x1e3   :  { %v3624_v5 = vld [vmem:[#allocation48_spill] sm:$0xff]  ;;  %v3630_v40 = vld [vmem:[#allocation61_spill] sm:$0xff] }
 0x1e4   :  { %2207 = vtanh.f32 %v711_v10  ;;  %756 = vmatpush.msrb.mxu1 %v711_v10  ;;  %v703_v35 = vsel %vm702_vm2, %v2204_v23, %v699_v9  ;;  %v3621_v10 = vld [vmem:[#allocation29_spill] sm:$0xff]  ;;  %v3623_v9 = vld [vmem:[#allocation12_spill] sm:$0xff] }
 0x1e5   :  { %2111 = vmatmul.msk.f32.vlgmr.msrb.gmra.mxu1 %vm348_vm1, %v347_v41  ;;  %v708_v1 = vsel %vm705_vm4, %v707_v6, %v703_v35  ;;  %v3626_v35 = vld [vmem:[#allocation52_spill] sm:$0xff]  ;;  %v3627_v6 = vld [vmem:[#allocation54_spill] sm:$0xff] }
 0x1e6   :  { %826 = vmatpush.msra.mxu1 %v2554_v56  ;;  %v715_v33 = vsub.f32 1.0, %v708_v1 }
 0x1e8   :  { %886 = vmatpush.msrb.mxu1 %v2677_v38  ;;  %v716_v47 = vmul.f32 %v715_v33, %v2830_v8  ;;  %v3593_v8 = vld [vmem:[#allocation60_spill] sm:$0xff] }
 0x1ea   :  { %v2208_v23 = vpop.eup %2207 }
 0x1eb   :  { %v713_v11 = vmul.f32 %v2208_v23, %v688_v54  ;;  %v3631_v54 = vld [vmem:[#allocation31_spill] sm:$0xff] }
 0x1ed   :  { %v714_v53 = vmul.f32 %v713_v11, %v708_v1  ;;  %2118 = vmatmul.msk.f32.vlgmr.msra.gmra.mxu1 %vm348_vm1, %v2869_v39  ;;  %v3629_v1 = vld [vmem:[#allocation58_spill] sm:$0xff]  ;;  %v3632_v11 = vld [vmem:[#allocation33_spill] sm:$0xff] }
 0x1ee   :  { %943 = vmatpush.msra.mxu1 %v2604_v12  ;;  %v3594_v12 = vld [vmem:[#allocation63_spill] sm:$0xff] }
 0x1ef   :  { %v717_v60 = vadd.f32 %v716_v47, %v714_v53  ;;  %v3633_v53 = vld [vmem:[#allocation35_spill] sm:$0xff] }
 0x1f0   :  { %944 = vmatpush.msra.mxu1 %v2610_v14  ;;  %v3595_v14 = vld [vmem:[#allocation64_spill] sm:$0xff] }
 0x1f1   :  { %736 = vmatpush.msra.mxu0 %v717_v60  ;;  %v3634_v60 = vld [vmem:[#allocation37_spill] sm:$0xff] }
 0x1f2   :  { %2110 = vmatmul.msk.f32.vlgmr.msra.gmra.mxu0 %vm348_vm1, %v347_v41  ;;  %945 = vmatpush.msra.mxu1 %v2616_v16  ;;  %v3596_v16 = vld [vmem:[#allocation65_spill] sm:$0xff]  ;;  %v3622_v41 = vld [vmem:[#allocation46_spill] sm:$0xff] }
 0x1f3   :  { %806 = vmatpush.msrb.mxu0 %v2567_v63 }
 0x1f4   :  { %946 = vmatpush.msra.mxu1 %v2624_v18  ;;  %v3597_v18 = vld [vmem:[#allocation66_spill] sm:$0xff] }
 0x1f5   :  { %866 = vmatpush.msra.mxu0 %v2675_v37  ;;  %2121 = vmatmul.msk.f32.vlgmr.msrb.gmra.mxu1 %vm348_vm1, %v2869_v39 }
 0x1f6   :  { %947 = vmatpush.msra.mxu1 %v2630_v20 }
 0x1f8   :  { %948 = vmatpush.msra.mxu1 %v2636_v22  ;;  %v3598_v22 = vld [vmem:[#allocation13_spill] sm:$0xff] }
 0x1fa   :  { %2117 = vmatmul.msk.f32.vlgmr.msrb.gmra.mxu0 %vm348_vm1, %v2869_v39  ;;  %949 = vmatpush.msra.mxu1 %v2642_v24  ;;  %v2113_v24 = vld [vmem:[%s3444_s4 + $0x10] sm:$0xff] }
 0x1fc   :  { %950 = vmatpush.msra.mxu1 %v2646_v25  ;;  %v3599_v25 = vld [vmem:[#allocation14_spill] sm:$0xff] }
 0x1fe   :  { %951 = vmatpush.msra.mxu1 %v2651_v26  ;;  %v3600_v26 = vld [vmem:[#allocation15_spill] sm:$0xff] }
 0x200   :  { %952 = vmatpush.msra.mxu1 %v2654_v27  ;;  %v3601_v27 = vld [vmem:[#allocation16_spill] sm:$0xff] }
 0x202   :  { %2120 = vmatmul.msk.f32.vlgmr.msra.gmra.mxu0 %vm348_vm1, %v2869_v39  ;;  %953 = vmatpush.msra.mxu1 %v2657_v28  ;;  %v3602_v28 = vld [vmem:[#allocation17_spill] sm:$0xff]  ;;  %v3608_v39 = vld [vmem:[#allocation32_spill] sm:$0xff] }
 0x204   :  { %954 = vmatpush.msra.mxu1 %v2661_v29  ;;  %v2114_v29 = vld [vmem:[%s3444_s4 + $0x18] sm:$0xff] }
 0x206   :  { %955 = vmatpush.msra.mxu1 %v2664_v30  ;;  %v3603_v30 = vld [vmem:[#allocation18_spill] sm:$0xff] }
 0x208   :  { %956 = vmatpush.msra.mxu1 %v2667_v31 }
 0x20a   :  { %957 = vmatpush.msra.mxu1 %v2670_v32  ;;  %v3604_v32 = vld [vmem:[#allocation19_spill] sm:$0xff] }
 0x20c   :  { %958 = vmatpush.msra.mxu1 %v2701_v45  ;;  %v3605_v45 = vld [vmem:[#allocation20_spill] sm:$0xff] }
 0x20e   :  { %1070 = vmatpush.msrb.mxu1 %v2709_v48  ;;  %v3606_v48 = vld [vmem:[#allocation30_spill] sm:$0xff] }
 0x210   :  { %1071 = vmatpush.msrb.mxu1 %v2718_v51 }
 0x212   :  { %1072 = vmatpush.msrb.mxu1 %v2727_v55 }
 0x214   :  { %1073 = vmatpush.msrb.mxu1 %v2737_v61 }
 0x216   :  { %1074 = vmatpush.msrb.mxu1 %v2745_v7 }
 0x218   :  { %1075 = vmatpush.msrb.mxu1 %v2754_v34 }
 0x21a   :  { %1076 = vmatpush.msrb.mxu1 %v2763_v52 }
 0x21c   :  { %1077 = vmatpush.msrb.mxu1 %v2773_v21 }
 0x21e   :  { %1078 = vmatpush.msrb.mxu1 %v2781_v19 }
 0x220   :  { %1079 = vmatpush.msrb.mxu1 %v2790_v17 }
 0x222   :  { %1080 = vmatpush.msrb.mxu1 %v2799_v15 }
 0x224   :  { %1081 = vmatpush.msrb.mxu1 %v3593_v8 }
 0x226   :  { %1082 = vmatpush.msrb.mxu1 %v3594_v12 }
 0x228   :  { %1083 = vmatpush.msrb.mxu1 %v3595_v14 }
 0x22a   :  { %1084 = vmatpush.msrb.mxu1 %v3596_v16 }
 0x22c   :  { %1085 = vmatpush.msrb.mxu1 %v3597_v18 }
 0x250   :  { %v3002_v0 = vpop.f32.mrf.mxu2 }
 0x258   :  { %v3004_v33 = vpop.f32.mrf.mxu2 }
 0x262   :  { %v2953_v20 = vpop.f32.mrf.mxu1 }
 0x263   :  { %935 = vmatpush.msrb.mxu0 %v2953_v20 }
 0x264   :  { %2124 = vmatmul.msk.f32.vlgmr.msrb.gmra.mxu0 %vm348_vm1, %v2113_v24 }
 0x265   :  { %1050 = vmatpush.msra.mxu0 %v3598_v22 }
 0x267   :  { %1051 = vmatpush.msra.mxu0 %v3599_v25  ;;  %v3636_v25 = vld [vmem:[#allocation41_spill] sm:$0xff] }
 0x269   :  { %1052 = vmatpush.msra.mxu0 %v3600_v26  ;;  %v3637_v26 = vld [vmem:[#allocation23_spill] sm:$0xff] }
 0x26b   :  { %1053 = vmatpush.msra.mxu0 %v3601_v27  ;;  %v3638_v27 = vld [vmem:[#allocation43_spill] sm:$0xff] }
 0x26c   :  { %2125 = vmatmul.msk.f32.gmra.mxu0 %vm348_vm1, %v2114_v29 }
 0x26d   :  { %1054 = vmatpush.msra.mxu0 %v3602_v28  ;;  %v3639_v28 = vld [vmem:[#allocation45_spill] sm:$0xff] }
 0x26f   :  { %1055 = vmatpush.msra.mxu0 %v3603_v30  ;;  %v2970_v31 = vpop.f32.mrf.mxu0  ;;  %v3641_v30 = vld [vmem:[#allocation49_spill] sm:$0xff] }
 0x270   :  { %912 = vmatpush.msrb.mxu2 %v2970_v31 }
 0x271   :  { %1056 = vmatpush.msra.mxu0 %v3604_v32  ;;  %2122 = vmatmul.msk.f32.vlgmr.msrb.gmra.mxu2 %vm348_vm1, %v2113_v24  ;;  %v3635_v24 = vld [vmem:[#allocation39_spill] sm:$0xff] }
 0x272   :  { %1010 = vmatpush.msra.mxu2 %v3606_v48  ;;  %v3642_v32 = vld [vmem:[#allocation51_spill] sm:$0xff] }
 0x273   :  { %1057 = vmatpush.msra.mxu0 %v3605_v45  ;;  %v3643_v45 = vld [vmem:[#allocation53_spill] sm:$0xff]  ;;  %v3644_v48 = vld [vmem:[#allocation55_spill] sm:$0xff] }
 0x274   :  { %1011 = vmatpush.msra.mxu2 %v3608_v39  ;;  %v3646_v39 = vld [vmem:[#allocation59_spill] sm:$0xff] }
 0x275   :  { %1058 = vmatpush.msra.mxu0 %v3607_v2  ;;  %v3645_v2 = vld [vmem:[#allocation57_spill] sm:$0xff] }
 0x276   :  { %1012 = vmatpush.msra.mxu2 %v3610_v44  ;;  %v828_v44 = vpop.f32.mrf.mxu1 }
 0x277   :  { %1059 = vmatpush.msra.mxu0 %v3609_v50  ;;  %v3647_v50 = vld [vmem:[#allocation62_spill] sm:$0xff] }
 0x278   :  { %1013 = vmatpush.msra.mxu2 %v3612_v43  ;;  %v808_v43 = vpop.f32.mrf.mxu0 }
 0x279   :  { %1060 = vmatpush.msra.mxu0 %v3611_v57  ;;  %2123 = vmatmul.msk.f32.gmra.mxu2 %vm348_vm1, %v2114_v29  ;;  %v3640_v29 = vld [vmem:[#allocation47_spill] sm:$0xff] }
 0x27a   :  { %1014 = vmatpush.msra.mxu2 %v3614_v36 }
 0x27b   :  { %1061 = vmatpush.msra.mxu0 %v3613_v59 }
 0x27c   :  { %1015 = vmatpush.msra.mxu2 %v3616_v62 }
 0x27d   :  { %1062 = vmatpush.msra.mxu0 %v3615_v42 }
 0x27e   :  { %1016 = vmatpush.msra.mxu2 %v3618_v46  ;;  %v888_v57 = vpop.f32.mrf.mxu1 }
 0x27f   :  { %1063 = vmatpush.msra.mxu0 %v3617_v49 }
 0x280   :  { %1017 = vmatpush.msra.mxu2 %v3620_v58  ;;  %v868_v36 = vpop.f32.mrf.mxu0 }
 0x281   :  { %1064 = vmatpush.msra.mxu0 %v3619_v3 }
 0x282   :  { %1018 = vmatpush.msra.mxu2 %v3622_v41 }
 0x283   :  { %1065 = vmatpush.msra.mxu0 %v3621_v10 }
 0x284   :  { %1019 = vmatpush.msra.mxu2 %v3624_v5 }
 0x285   :  { %1230 = vmatpush.msrb.mxu0 %v3623_v9 }
 0x286   :  { %1020 = vmatpush.msra.mxu2 %v3625_v13 }
 0x288   :  { %1021 = vmatpush.msra.mxu2 %v3626_v35 }
 0x28a   :  { %1022 = vmatpush.msra.mxu2 %v3627_v6 }
 0x28c   :  { %1023 = vmatpush.msra.mxu2 %v3628_v4 }
 0x28e   :  { %1024 = vmatpush.msra.mxu2 %v3629_v1 }
 0x290   :  { %1025 = vmatpush.msra.mxu2 %v3630_v40 }
 0x2e1   :  { %v3023_v58 = vpop.f32.mrf.mxu0 }
 0x2f4   :  { %v914_v23 = vpop.f32.mrf.mxu2 }
 0x2f5   :  { %959 = vmatmul.f32.vlgmr.msra.gmra.mxu1 %v914_v23 }
 0x2f6   :  { %1474 = vmatpush.msra.mxu1 %v3631_v54 }
 0x2f8   :  { %1475 = vmatpush.msra.mxu1 %v3632_v11 }
 0x2fa   :  { %1476 = vmatpush.msra.mxu1 %v3633_v53 }
 0x2fc   :  { %v917_v47 = vpop.f32.mrf.mxu2  ;;  %1477 = vmatpush.msra.mxu1 %v3634_v60 }
 0x2fd   :  { %v1009_v22 = vadd.f32 %v917_v47, %v914_v23  ;;  %962 = vmatmul.f32.gmra.mxu1 %v917_v47 }
 0x2fe   :  { %1478 = vmatpush.msra.mxu1 %v3635_v24  ;;  %v940_v24 = vpop.f32.mrf.mxu0 }
 0x2ff   :  { %1026 = vmatmul.f32.vlgmr.msra.gmra.mxu2 %v1009_v22  ;;  %1046 = vmatmul.f32.vlgmr.msra.gmra.mxu3 %v1009_v22 }
 0x300   :  { %1066 = vmatmul.f32.vlgmr.msra.gmra.mxu0 %v1009_v22  ;;  %1479 = vmatpush.msra.mxu1 %v3636_v25 }
 0x301   :  { %1290 = vmatpush.msra.mxu0 %v3637_v26 }
 0x302   :  { %1480 = vmatpush.msra.mxu1 %v3638_v27 }
 0x304   :  { %1481 = vmatpush.msra.mxu1 %v3639_v28 }
 0x305   :  { %1086 = vmatmul.f32.vlgmr.msrb.gmra.mxu1 %v1009_v22 }
 0x306   :  { %1482 = vmatpush.msra.mxu1 %v3640_v29 }
 0x308   :  { %1483 = vmatpush.msra.mxu1 %v3641_v30 }
 0x30a   :  { %1484 = vmatpush.msra.mxu1 %v3642_v32 }
 0x30c   :  { %1485 = vmatpush.msra.mxu1 %v3643_v45 }
 0x30e   :  { %1486 = vmatpush.msra.mxu1 %v3644_v48 }
 0x310   :  { %1487 = vmatpush.msra.mxu1 %v3645_v2 }
 0x312   :  { %1488 = vmatpush.msra.mxu1 %v3646_v39 }
 0x314   :  { %1489 = vmatpush.msra.mxu1 %v3647_v50 }
 0x372   :  { %v960_v59 = vpop.f32.mrf.mxu1 }
 0x373   :  { %v966_v42 = vadd.f32 %v960_v59, %v888_v57 }
 0x375   :  { %v2126_v62 = vmul.f32 -1.442695, %v966_v42 }
 0x377   :  { %2209 = vpow2.f32 %v2126_v62 }
 0x37a   :  { %v963_v49 = vpop.f32.mrf.mxu1 }
 0x37b   :  { %v967_v46 = vadd.f32 %v963_v49, %v888_v57 }
 0x37d   :  { %v2210_v3 = vpop.eup %2209  ;;  %v2127_v10 = vmul.f32 -1.442695, %v967_v46  ;;  %v3045_v46 = vld [vmem:[%s3443_s3 + $0x10] sm:$0xff] }
 0x37e   :  { %v3025_v41 = vadd.f32 1.0, %v2210_v3  ;;  %2137 = vmatmul.msk.f32.vlgmr.msrb.gmra.mxu0 %vm348_vm1, %v3045_v46 }
 0x37f   :  { %2211 = vpow2.f32 %v2127_v10 }
 0x380   :  { %2213 = vrcp.f32 %v3025_v41  ;;  %v987_v10 = vand.u32 2147483648, %v3025_v41  ;;  %vm981_vm11 = vweird.f32 %v3025_v41 }
 0x382   :  { %v1027_v5 = vpop.f32.mrf.mxu2  ;;  %v1047_v13 = vpop.f32.mrf.mxu3 }
 0x383   :  { %v1090_v35 = vadd.f32 %v1027_v5, %v808_v43  ;;  %v1091_v6 = vadd.f32 %v1047_v13, %v828_v44  ;;  %v1087_v4 = vpop.f32.mrf.mxu1  ;;  %v1067_v44 = vpop.f32.mrf.mxu0  ;;  %v985_v13 = vand.u32 2147483647, %v3025_v41 }
 0x384   :  { %v1093_v23 = vadd.f32 %v1087_v4, %v868_v36  ;;  %v1092_v36 = vadd.f32 %v1067_v44, %v3004_v33 }
 0x385   :  { %v2212_v54 = vpop.eup %2211  ;;  %v2128_v11 = vmul.f32 -1.442695, %v1090_v35  ;;  %v2129_v53 = vmul.f32 -1.442695, %v1091_v6  ;;  %vm986_vm14 = vcmp.eq.f32.partialorder %v985_v13, 8.507059e+37 }
 0x386   :  { %v3028_v47 = vpop.eup %2213  ;;  %v975_v60 = vadd.f32 1.0, %v2212_v54  ;;  %v2130_v22 = vmul.f32 -1.442695, %v1093_v23  ;;  %2140 = vmatmul.msk.f32.vlgmr.msra.gmra.mxu0 %vm348_vm1, %v3045_v46 }
 0x387   :  { %2215 = vpow2.f32 %v2128_v11  ;;  %v977_v25 = vmul.f32 %v3028_v47, %v3025_v41  ;;  %vm982_vm8 = vweird.f32 %v3028_v47 }
 0x388   :  { %2217 = vrcp.f32 %v975_v60  ;;  %v1002_v59 = vand.u32 2147483648, %v975_v60  ;;  %vm996_vm9 = vweird.f32 %v975_v60  ;;  %v1000_v49 = vand.u32 2147483647, %v975_v60  ;;  %vm3062_vm12 = vmor %vm981_vm11, %vm982_vm8 }
 0x389   :  { %2219 = vpow2.f32 %v2129_v53  ;;  %v978_v28 = vsub.f32 1.0, %v977_v25 }
 0x38a   :  { %2221 = vpow2.f32 %v2130_v22  ;;  %v1003_v23 = vor.u32 1.1754944e-38, %v1002_v59  ;;  %vm1001_vm13 = vcmp.eq.f32.partialorder %v1000_v49, 8.507059e+37 }
 0x38b   :  { %v979_v39 = vmul.f32 %v3028_v47, %v978_v28 }
 0x38d   :  { %v2216_v27 = vpop.eup %2215  ;;  %v980_v42 = vadd.f32 %v3028_v47, %v979_v39 }
 0x38e   :  { %v2218_v29 = vpop.eup %2217  ;;  %v1097_v30 = vadd.f32 1.0, %v2216_v27 }
 0x38f   :  { %v2220_v32 = vpop.eup %2219  ;;  %v992_v45 = vmul.f32 %v2218_v29, %v975_v60  ;;  %vm997_vm7 = vweird.f32 %v2218_v29  ;;  %v984_v41 = vsel %vm3062_vm12, %v3028_v47, %v980_v42  ;;  %v988_v60 = vor.u32 1.1754944e-38, %v987_v10 }
 0x390   :  { %v2222_v48 = vpop.eup %2221  ;;  %2223 = vrcp.f32 %v1097_v30  ;;  %v3032_v2 = vadd.f32 1.0, %v2220_v32  ;;  %vm3048_vm10 = vmor %vm996_vm9, %vm997_vm7  ;;  %v1109_v27 = vand.u32 2147483648, %v1097_v30  ;;  %vm1103_vm0 = vweird.f32 %v1097_v30 }
 0x391   :  { %v993_v50 = vsub.f32 1.0, %v992_v45  ;;  %v3035_v57 = vadd.f32 1.0, %v2222_v48  ;;  %v989_v48 = vsel %vm986_vm14, %v988_v60, %v984_v41 }
 0x392   :  { %2225 = vrcp.f32 %v3032_v2  ;;  %v1110_v47 = vor.u32 1.1754944e-38, %v1109_v27  ;;  %v1006_v59 = vmul.f32 %v989_v48, %v3023_v58  ;;  %v2115_v58 = vld [vmem:[%s3445_s5 + $0x8] sm:$0xff]  ;;  %vm1122_vm8 = vweird.f32 %v3032_v2 }
 0x393   :  { %v994_v43 = vmul.f32 %v2218_v29, %v993_v50  ;;  %2227 = vrcp.f32 %v3035_v57  ;;  %vm1142_vm5 = vweird.f32 %v3035_v57  ;;  %v1146_v5 = vand.u32 2147483647, %v3035_v57  ;;  %v3119_v48 = vld [vmem:[#allocation7 + $0x48] sm:$0xff] }
 0x394   :  { %2229 = vtanh.f32 %v1092_v36 }
 0x395   :  { %v995_v62 = vadd.f32 %v2218_v29, %v994_v43  ;;  %vm1147_vm9 = vcmp.eq.f32.partialorder %v1146_v5, 8.507059e+37  ;;  %v3232_v5 = vld [vmem:[#allocation5 + $0x90] sm:$0xff] }
 0x396   :  { %v2224_v3 = vpop.eup %2223  ;;  %3658 = vst [vmem:[#allocation14_spill] sm:$0xff] %v3232_v5 }
 0x397   :  { %v1099_v33 = vmul.f32 %v2224_v3, %v1097_v30  ;;  %v999_v35 = vsel %vm3048_vm10, %v2218_v29, %v995_v62  ;;  %vm1104_vm15 = vweird.f32 %v2224_v3  ;;  %v1107_v29 = vand.u32 2147483647, %v1097_v30 }
 0x398   :  { %v3058_v6 = vpop.eup %2225  ;;  %v1004_v25 = vsel %vm1001_vm13, %v1003_v23, %v999_v35  ;;  %vm1105_vm2 = vmor %vm1103_vm0, %vm1104_vm15  ;;  %v1128_v35 = vand.u32 2147483648, %v3032_v2 }
 0x399   :  { %v2228_v54 = vpop.eup %2227  ;;  %v1100_v11 = vsub.f32 1.0, %v1099_v33  ;;  %v1118_v53 = vmul.f32 %v3058_v6, %v3032_v2  ;;  %v1007_v39 = vmul.f32 %v1004_v25, %v940_v24  ;;  %vm1108_vm3 = vcmp.eq.f32.partialorder %v1107_v29, 8.507059e+37  ;;  %v3097_v29 = vld [vmem:[#allocation7 + $0x70] sm:$0xff] }
 0x39a   :  { %v1138_v22 = vmul.f32 %v2228_v54, %v3035_v57  ;;  %v2230_v44 = vpop.eup %2229  ;;  %vm1143_vm4 = vweird.f32 %v2228_v54  ;;  %v1148_v24 = vand.u32 2147483648, %v3035_v57  ;;  %vm1123_vm7 = vweird.f32 %v3058_v6 }
 0x39b   :  { %v1101_v28 = vmul.f32 %v2224_v3, %v1100_v11  ;;  %v1119_v32 = vsub.f32 1.0, %v1118_v53  ;;  %v1008_v10 = vadd.f32 %v1007_v39, %v1006_v59  ;;  %vm1144_vm6 = vmor %vm1142_vm5, %vm1143_vm4  ;;  %v1126_v57 = vand.u32 2147483647, %v3032_v2  ;;  %v3094_v2 = vld [vmem:[#allocation7 + $0x78] sm:$0xff]  ;;  %v3122_v39 = vld [vmem:[#allocation7 + $0x40] sm:$0xff] }
 0x39c   :  { %v1139_v45 = vsub.f32 1.0, %v1138_v22  ;;  %v1149_v4 = vor.u32 1.1754944e-38, %v1148_v24  ;;  %vm1124_vm10 = vmor %vm1122_vm8, %vm1123_vm7  ;;  %v1129_v11 = vor.u32 1.1754944e-38, %v1128_v35  ;;  %v3139_v59 = vld [vmem:[#allocation7 + $0x18] sm:$0xff]  ;;  %v3228_v24 = vld [vmem:[#allocation5 + $0x180] sm:$0xff] }
 0x39d   :  { %v1102_v50 = vadd.f32 %v2224_v3, %v1101_v28  ;;  %v1120_v42 = vmul.f32 %v3058_v6, %v1119_v32  ;;  %vm1127_vm11 = vcmp.eq.f32.partialorder %v1126_v57, 8.507059e+37  ;;  %v3111_v32 = vld [vmem:[#allocation7 + $0x58] sm:$0xff]  ;;  %3657 = vst [vmem:[#allocation13_spill] sm:$0xff] %v3228_v24  ;;  %v3247_v35 = vld [vmem:[#allocation5 + $0x120] sm:$0xff] }
 0x39e   :  { %v1140_v43 = vmul.f32 %v2228_v54, %v1139_v45  ;;  %v3114_v45 = vld [vmem:[#allocation7 + $0x50] sm:$0xff]  ;;  %3663 = vst [vmem:[#allocation19_spill] sm:$0xff] %v3247_v35  ;;  %v3253_v57 = vld [vmem:[#allocation5 + $0x100] sm:$0xff] }
 0x39f   :  { %v1106_v36 = vsel %vm1105_vm2, %v2224_v3, %v1102_v50  ;;  %v1121_v3 = vadd.f32 %v3058_v6, %v1120_v42  ;;  %v3125_v50 = vld [vmem:[#allocation7 + $0x38] sm:$0xff]  ;;  %v3145_v42 = vld [vmem:[#allocation7 + $0x8] sm:$0xff]  ;;  %3665 = vst [vmem:[#allocation30_spill] sm:$0xff] %v3253_v57 }
 0x3a0   :  { %v1111_v62 = vsel %vm1108_vm3, %v1110_v47, %v1106_v36  ;;  %v1141_v49 = vadd.f32 %v2228_v54, %v1140_v43  ;;  %v3133_v43 = vld [vmem:[#allocation7 + $0x28] sm:$0xff]  ;;  %v3136_v47 = vld [vmem:[#allocation7 + $0x20] sm:$0xff]  ;;  %v3142_v36 = vld [vmem:[#allocation7 + $0x10] sm:$0xff] }
 0x3a1   :  { %v1152_v30 = vmul.f32 %v2230_v44, %v1111_v62  ;;  %v3128_v44 = vld [vmem:[#allocation7 + $0x30] sm:$0xff]  ;;  %v3151_v62 = vld [vmem:[#allocation5 + $0x1f8] sm:$0xff] }
 0x3a2   :  { %v1145_v13 = vsel %vm1144_vm6, %v2228_v54, %v1141_v49  ;;  %v1125_v54 = vsel %vm1124_vm10, %v3058_v6, %v1121_v3  ;;  %v3101_v6 = vld [vmem:[#allocation7 + $0x68] sm:$0xff]  ;;  %v3219_v49 = vld [vmem:[#allocation5 + $0xd0] sm:$0xff]  ;;  %v3241_v3 = vld [vmem:[#allocation5 + $0x140] sm:$0xff] }
 0x3a3   :  { %v1153_v33 = vadd.f32 %v1152_v30, %v1008_v10  ;;  %v1150_v23 = vsel %vm1147_vm9, %v1149_v4, %v1145_v13  ;;  %v1130_v60 = vsel %vm1127_vm11, %v1129_v11, %v1125_v54  ;;  %3654 = vst [vmem:[#allocation64_spill] sm:$0xff] %v3219_v49  ;;  %v3222_v10 = vld [vmem:[#allocation5 + $0x1a0] sm:$0xff]  ;;  %v3225_v30 = vld [vmem:[#allocation5 + $0xb0] sm:$0xff] }
 0x3a4   :  { %v1157_v53 = vsub.f32 1.0, %v1150_v23  ;;  %3655 = vst [vmem:[#allocation65_spill] sm:$0xff] %v3222_v10  ;;  %v3244_v13 = vld [vmem:[#allocation5 + $0x50] sm:$0xff]  ;;  %v3259_v54 = vld [vmem:[#allocation5 + $0xe0] sm:$0xff] }
 0x3a5   :  { %2231 = vtanh.f32 %v1153_v33  ;;  %1198 = vmatpush.msrb.mxu3 %v1153_v33  ;;  %3656 = vst [vmem:[#allocation66_spill] sm:$0xff] %v3225_v30  ;;  %v3235_v33 = vld [vmem:[#allocation5 + $0x160] sm:$0xff]  ;;  %v3250_v4 = vld [vmem:[#allocation5 + $0x30] sm:$0xff] }
 0x3a6   :  { %2132 = vmatmul.msk.f32.vlgmr.msrb.gmra.mxu3 %vm348_vm1, %v2115_v58  ;;  %v1158_v27 = vmul.f32 %v1157_v53, %v3002_v0  ;;  %v3106_v0 = vld [vmem:[#allocation7 + $0x60] sm:$0xff]  ;;  %3659 = vst [vmem:[#allocation15_spill] sm:$0xff] %v3235_v33 }
 0x3a7   :  { %1270 = vmatpush.msra.mxu3 %v2554_v56  ;;  %3661 = vst [vmem:[#allocation17_spill] sm:$0xff] %v3241_v3  ;;  %v3263_v11 = vld [vmem:[#allocation5 + $0xc0] sm:$0xff] }
 0x3a8   :  { %3662 = vst [vmem:[#allocation18_spill] sm:$0xff] %v3244_v13  ;;  %v3266_v53 = vld [vmem:[#allocation5 + $0xa0] sm:$0xff] }
 0x3a9   :  { %1330 = vmatpush.msrb.mxu3 %v2677_v38  ;;  %3664 = vst [vmem:[#allocation20_spill] sm:$0xff] %v3250_v4 }
 0x3aa   :  { %3667 = vst [vmem:[#allocation32_spill] sm:$0xff] %v3259_v54 }
 0x3ab   :  { %v2232_v41 = vpop.eup %2231  ;;  %3668 = vst [vmem:[#allocation22_spill] sm:$0xff] %v3263_v11 }
 0x3ac   :  { %v1155_v22 = vmul.f32 %v2232_v41, %v1130_v60  ;;  %3669 = vst [vmem:[#allocation34_spill] sm:$0xff] %v3266_v53  ;;  %v3269_v41 = vld [vmem:[#allocation5 + $0x80] sm:$0xff] }
 0x3ad   :  { %3670 = vst [vmem:[#allocation24_spill] sm:$0xff] %v3269_v41  ;;  %v3272_v60 = vld [vmem:[#allocation5 + $0x60] sm:$0xff] }
 0x3ae   :  { %v1156_v25 = vmul.f32 %v1155_v22, %v1150_v23  ;;  %2139 = vmatmul.msk.f32.vlgmr.msra.gmra.mxu3 %vm348_vm1, %v3045_v46  ;;  %v3256_v23 = vld [vmem:[#allocation5 + $0x10] sm:$0xff]  ;;  %3671 = vst [vmem:[#allocation36_spill] sm:$0xff] %v3272_v60  ;;  %v3275_v22 = vld [vmem:[#allocation5 + $0x40] sm:$0xff] }
 0x3af   :  { %1387 = vmatpush.msra.mxu3 %v3094_v2  ;;  %3666 = vst [vmem:[#allocation21_spill] sm:$0xff] %v3256_v23 }
 0x3b0   :  { %v1159_v28 = vadd.f32 %v1158_v27, %v1156_v25  ;;  %3672 = vst [vmem:[#allocation25_spill] sm:$0xff] %v3275_v22 }
 0x3b1   :  { %1388 = vmatpush.msra.mxu3 %v3097_v29 }
 0x3b2   :  { %1178 = vmatpush.msrb.mxu2 %v1159_v28  ;;  %v2328_v28 = vld [vmem:[#allocation5 + $0x1e8] sm:$0xff] }
 0x3b3   :  { %2131 = vmatmul.msk.f32.vlgmr.msrb.gmra.mxu2 %vm348_vm1, %v2115_v58  ;;  %1389 = vmatpush.msra.mxu3 %v3101_v6  ;;  %v3238_v58 = vld [vmem:[#allocation5 + $0x70] sm:$0xff] }
 0x3b4   :  { %1250 = vmatpush.msra.mxu2 %v2567_v63  ;;  %3660 = vst [vmem:[#allocation16_spill] sm:$0xff] %v3238_v58 }
 0x3b5   :  { %1390 = vmatpush.msra.mxu3 %v3106_v0 }
 0x3b6   :  { %1310 = vmatpush.msrb.mxu2 %v2675_v37  ;;  %2142 = vmatmul.msk.f32.vlgmr.msrb.gmra.mxu3 %vm348_vm1, %v3045_v46 }
 0x3b7   :  { %1391 = vmatpush.msra.mxu3 %v3111_v32 }
 0x3b9   :  { %1392 = vmatpush.msra.mxu3 %v3114_v45 }
 0x3bb   :  { %2138 = vmatmul.msk.f32.vlgmr.msra.gmra.mxu2 %vm348_vm1, %v3045_v46  ;;  %1393 = vmatpush.msra.mxu3 %v3119_v48 }
 0x3bd   :  { %1394 = vmatpush.msra.mxu3 %v3122_v39 }
 0x3bf   :  { %1395 = vmatpush.msra.mxu3 %v3125_v50 }
 0x3c1   :  { %1396 = vmatpush.msra.mxu3 %v3128_v44 }
 0x3c3   :  { %2141 = vmatmul.msk.f32.vlgmr.msrb.gmra.mxu2 %vm348_vm1, %v3045_v46  ;;  %1397 = vmatpush.msra.mxu3 %v3133_v43  ;;  %v3148_v46 = vld [vmem:[#allocation7] sm:$0xff] }
 0x3c5   :  { %1398 = vmatpush.msra.mxu3 %v3136_v47 }
 0x3c7   :  { %1399 = vmatpush.msra.mxu3 %v3139_v59 }
 0x3c9   :  { %1400 = vmatpush.msra.mxu3 %v3142_v36 }
 0x3cb   :  { %1401 = vmatpush.msra.mxu3 %v3145_v42 }
 0x3cd   :  { %1402 = vmatpush.msra.mxu3 %v3148_v46 }
 0x3cf   :  { %1514 = vmatpush.msrb.mxu3 %v3151_v62 }
 0x3d1   :  { %1515 = vmatpush.msrb.mxu3 %v2718_v51 }
 0x3d3   :  { %1516 = vmatpush.msrb.mxu3 %v2727_v55  ;;  %v3186_v55 = vld [vmem:[#allocation5 + $0x190] sm:$0xff] }
 0x3d5   :  { %1517 = vmatpush.msrb.mxu3 %v2737_v61  ;;  %v3189_v61 = vld [vmem:[#allocation5 + $0x170] sm:$0xff] }
 0x3d7   :  { %1518 = vmatpush.msrb.mxu3 %v2745_v7  ;;  %v2135_v7 = vld [vmem:[%s3444_s4 + $0x28] sm:$0xff] }
 0x3d9   :  { %1519 = vmatpush.msrb.mxu3 %v2754_v34 }
 0x3db   :  { %1520 = vmatpush.msrb.mxu3 %v2763_v52 }
 0x3dd   :  { %1521 = vmatpush.msrb.mxu3 %v2773_v21  ;;  %v3183_v21 = vld [vmem:[#allocation5 + $0x1b0] sm:$0xff] }
 0x3df   :  { %1522 = vmatpush.msrb.mxu3 %v2781_v19  ;;  %v3173_v19 = vld [vmem:[#allocation5 + $0x1f0] sm:$0xff] }
 0x3e1   :  { %1523 = vmatpush.msrb.mxu3 %v2790_v17  ;;  %v3180_v17 = vld [vmem:[#allocation5 + $0x1d0] sm:$0xff] }
 0x3e3   :  { %1524 = vmatpush.msrb.mxu3 %v2799_v15  ;;  %v2134_v15 = vld [vmem:[%s3444_s4 + $0x20] sm:$0xff] }
 0x3e5   :  { %1525 = vmatpush.msrb.mxu3 %v3593_v8 }
 0x3e7   :  { %1526 = vmatpush.msrb.mxu3 %v3594_v12  ;;  %v3199_v12 = vld [vmem:[#allocation5 + $0x150] sm:$0xff] }
 0x3e9   :  { %1527 = vmatpush.msrb.mxu3 %v3595_v14  ;;  %v3203_v14 = vld [vmem:[#allocation5 + $0x130] sm:$0xff] }
 0x3eb   :  { %1528 = vmatpush.msrb.mxu3 %v3596_v16  ;;  %v3207_v16 = vld [vmem:[#allocation5 + $0x110] sm:$0xff] }
 0x3ed   :  { %1529 = vmatpush.msrb.mxu3 %v3597_v18  ;;  %v3210_v18 = vld [vmem:[#allocation5 + $0x1e0] sm:$0xff] }
 0x429   :  { %v1200_v51 = vpop.f32.mrf.mxu3 }
 0x42a   :  { %v3170_v52 = vadd.f32 %v1200_v51, %v2953_v20  ;;  %v3213_v20 = vld [vmem:[#allocation5 + $0xf0] sm:$0xff]  ;;  %v2329_v51 = vld [vmem:[#allocation5 + $0x1c8] sm:$0xff] }
 0x42b   :  { %3652 = vst [vmem:[#allocation60_spill] sm:$0xff] %v3213_v20 }
 0x42c   :  { %1379 = vmatpush.msra.mxu2 %v3170_v52 }
 0x42d   :  { %2145 = vmatmul.msk.f32.vlgmr.msra.gmra.mxu2 %vm348_vm1, %v2134_v15 }
 0x42e   :  { %1494 = vmatpush.msrb.mxu2 %v3173_v19 }
 0x430   :  { %1495 = vmatpush.msrb.mxu2 %v3180_v17 }
 0x432   :  { %1496 = vmatpush.msrb.mxu2 %v3183_v21 }
 0x434   :  { %1497 = vmatpush.msrb.mxu2 %v3186_v55 }
 0x435   :  { %2146 = vmatmul.msk.f32.gmra.mxu2 %vm348_vm1, %v2135_v7 }
 0x436   :  { %1498 = vmatpush.msrb.mxu2 %v3189_v61  ;;  %v1180_v34 = vpop.f32.mrf.mxu2 }
 0x437   :  { %v3197_v8 = vadd.f32 %v1180_v34, %v2970_v31  ;;  %v3216_v31 = vld [vmem:[#allocation5 + $0x1c0] sm:$0xff]  ;;  %v2331_v34 = vld [vmem:[#allocation5 + $0x188] sm:$0xff] }
 0x438   :  { %1499 = vmatpush.msrb.mxu2 %v3199_v12  ;;  %3653 = vst [vmem:[#allocation63_spill] sm:$0xff] %v3216_v31 }
 0x439   :  { %1356 = vmatpush.msrb.mxu0 %v3197_v8 }
 0x43a   :  { %1500 = vmatpush.msrb.mxu2 %v3203_v14  ;;  %2143 = vmatmul.msk.f32.vlgmr.msrb.gmra.mxu0 %vm348_vm1, %v2134_v15  ;;  %v2330_v15 = vld [vmem:[#allocation5 + $0x1a8] sm:$0xff] }
 0x43b   :  { %1454 = vmatpush.msra.mxu0 %v3210_v18 }
 0x43c   :  { %1501 = vmatpush.msrb.mxu2 %v3207_v16 }
 0x43d   :  { %1455 = vmatpush.msra.mxu0 %v3216_v31 }
 0x43e   :  { %1502 = vmatpush.msrb.mxu2 %v3213_v20 }
 0x43f   :  { %1456 = vmatpush.msra.mxu0 %v3222_v10 }
 0x440   :  { %1503 = vmatpush.msrb.mxu2 %v3219_v49 }
 0x441   :  { %1457 = vmatpush.msra.mxu0 %v3228_v24 }
 0x442   :  { %1504 = vmatpush.msrb.mxu2 %v3225_v30  ;;  %2144 = vmatmul.msk.f32.gmra.mxu0 %vm348_vm1, %v2135_v7 }
 0x443   :  { %1458 = vmatpush.msra.mxu0 %v3235_v33 }
 0x444   :  { %1505 = vmatpush.msrb.mxu2 %v3232_v5 }
 0x445   :  { %1459 = vmatpush.msra.mxu0 %v3241_v3 }
 0x446   :  { %1506 = vmatpush.msrb.mxu2 %v3238_v58 }
 0x447   :  { %1460 = vmatpush.msra.mxu0 %v3247_v35 }
 0x448   :  { %1507 = vmatpush.msrb.mxu2 %v3244_v13 }
 0x449   :  { %1461 = vmatpush.msra.mxu0 %v3253_v57 }
 0x44a   :  { %1508 = vmatpush.msrb.mxu2 %v3250_v4 }
 0x44b   :  { %1462 = vmatpush.msra.mxu0 %v3259_v54 }
 0x44c   :  { %1509 = vmatpush.msrb.mxu2 %v3256_v23 }
 0x44d   :  { %1463 = vmatpush.msra.mxu0 %v3263_v11 }
 0x44e   :  { %1674 = vmatpush.msra.mxu2 %v3623_v9  ;;  %v3280_v9 = vpop.f32.mrf.mxu0 }
 0x44f   :  { %1464 = vmatpush.msra.mxu0 %v3266_v53 }
 0x451   :  { %1465 = vmatpush.msra.mxu0 %v3269_v41  ;;  %v1252_v41 = vpop.f32.mrf.mxu2 }
 0x453   :  { %1466 = vmatpush.msra.mxu0 %v3272_v60  ;;  %v2334_v60 = vld [vmem:[#allocation5 + $0x128] sm:$0xff] }
 0x455   :  { %1467 = vmatpush.msra.mxu0 %v3275_v22 }
 0x456   :  { %v3282_v25 = vpop.f32.mrf.mxu0 }
 0x457   :  { %1468 = vmatpush.msra.mxu0 %v3629_v1  ;;  %v2332_v1 = vld [vmem:[#allocation5 + $0x168] sm:$0xff] }
 0x459   :  { %1469 = vmatpush.msra.mxu0 %v3630_v40  ;;  %v2333_v40 = vld [vmem:[#allocation5 + $0x148] sm:$0xff] }
 0x4b7   :  { %v1358_v27 = vpop.f32.mrf.mxu0 }
 0x4b8   :  { %1403 = vmatmul.f32.vlgmr.msra.gmra.mxu3 %v1358_v27 }
 0x4b9   :  { %1918 = vmatpush.msra.mxu3 %v2328_v28  ;;  %v2335_v28 = vld [vmem:[#allocation5 + $0x108] sm:$0xff] }
 0x4bb   :  { %1919 = vmatpush.msra.mxu3 %v2329_v51  ;;  %v2336_v51 = vld [vmem:[#allocation5 + $0xe8] sm:$0xff] }
 0x4bd   :  { %1920 = vmatpush.msra.mxu3 %v2330_v15  ;;  %v2337_v15 = vld [vmem:[#allocation5 + $0xc8] sm:$0xff] }
 0x4bf   :  { %v1361_v7 = vpop.f32.mrf.mxu0  ;;  %1921 = vmatpush.msra.mxu3 %v2331_v34  ;;  %v2340_v34 = vld [vmem:[#allocation5 + $0x68] sm:$0xff] }
 0x4c0   :  { %v1453_v22 = vadd.f32 %v1361_v7, %v1358_v27  ;;  %1406 = vmatmul.f32.gmra.mxu3 %v1361_v7  ;;  %v2338_v27 = vld [vmem:[#allocation5 + $0xa8] sm:$0xff] }
 0x4c1   :  { %1922 = vmatpush.msra.mxu3 %v2332_v1  ;;  %v2339_v7 = vld [vmem:[#allocation5 + $0x88] sm:$0xff] }
 0x4c2   :  { %1470 = vmatmul.f32.vlgmr.msra.gmra.mxu0 %v1453_v22  ;;  %1490 = vmatmul.f32.vlgmr.msra.gmra.mxu1 %v1453_v22  ;;  %v2341_v1 = vld [vmem:[#allocation5 + $0x48] sm:$0xff] }
 0x4c3   :  { %1510 = vmatmul.f32.vlgmr.msrb.gmra.mxu2 %v1453_v22  ;;  %1923 = vmatpush.msra.mxu3 %v2333_v40  ;;  %v2342_v40 = vld [vmem:[#allocation5 + $0x28] sm:$0xff] }
 0x4c4   :  { %1734 = vmatpush.msrb.mxu2 %v3637_v26  ;;  %v2343_v26 = vld [vmem:[#allocation5 + $0x8] sm:$0xff] }
 0x4c5   :  { %1924 = vmatpush.msra.mxu3 %v2334_v60  ;;  %v1272_v60 = vpop.f32.mrf.mxu3 }
 0x4c7   :  { %1925 = vmatpush.msra.mxu3 %v2335_v28 }
 0x4c8   :  { %1530 = vmatmul.f32.vlgmr.msrb.gmra.mxu3 %v1453_v22  ;;  %v1312_v22 = vpop.f32.mrf.mxu2 }
 0x4c9   :  { %1926 = vmatpush.msra.mxu3 %v2336_v51 }
 0x4cb   :  { %1927 = vmatpush.msra.mxu3 %v2337_v15 }
 0x4cd   :  { %1928 = vmatpush.msra.mxu3 %v2338_v27  ;;  %v1332_v28 = vpop.f32.mrf.mxu3 }
 0x4cf   :  { %1929 = vmatpush.msra.mxu3 %v2339_v7 }
 0x4d0   :  { %v3285_v27 = vpop.f32.mrf.mxu2 }
 0x4d1   :  { %1930 = vmatpush.msra.mxu3 %v2340_v34 }
 0x4d3   :  { %1931 = vmatpush.msra.mxu3 %v2341_v1 }
 0x4d5   :  { %1932 = vmatpush.msra.mxu3 %v2342_v40 }
 0x4d7   :  { %1933 = vmatpush.msra.mxu3 %v2343_v26 }
 0x53b   :  { %v1404_v53 = vpop.f32.mrf.mxu3 }
 0x53c   :  { %v1410_v51 = vadd.f32 %v1404_v53, %v1332_v28 }
 0x53e   :  { %v2147_v11 = vmul.f32 -1.442695, %v1410_v51  ;;  %v3287_v51 = vpop.f32.mrf.mxu2 }
 0x53f   :  { %v1471_v15 = vpop.f32.mrf.mxu0  ;;  %v1491_v23 = vpop.f32.mrf.mxu1 }
 0x540   :  { %2233 = vpow2.f32 %v2147_v11  ;;  %v1534_v7 = vadd.f32 %v1471_v15, %v1252_v41  ;;  %v1535_v34 = vadd.f32 %v1491_v23, %v1272_v60 }
 0x542   :  { %v2149_v54 = vmul.f32 -1.442695, %v1534_v7  ;;  %v2150_v1 = vmul.f32 -1.442695, %v1535_v34 }
 0x543   :  { %v1407_v4 = vpop.f32.mrf.mxu3 }
 0x544   :  { %2235 = vpow2.f32 %v2149_v54  ;;  %v1411_v40 = vadd.f32 %v1407_v4, %v1332_v28 }
 0x545   :  { %2237 = vpow2.f32 %v2150_v1 }
 0x546   :  { %v2234_v26 = vpop.eup %2233  ;;  %v2148_v57 = vmul.f32 -1.442695, %v1411_v40  ;;  %v1511_v1 = vpop.f32.mrf.mxu2 }
 0x547   :  { %v1418_v13 = vadd.f32 1.0, %v2234_v26 }
 0x548   :  { %2239 = vpow2.f32 %v2148_v57 }
 0x549   :  { %2241 = vrcp.f32 %v1418_v13  ;;  %vm1425_vm13 = vweird.f32 %v1418_v13 }
 0x54a   :  { %v2236_v53 = vpop.eup %2235 }
 0x54b   :  { %v2238_v35 = vpop.eup %2237  ;;  %v1541_v58 = vadd.f32 1.0, %v2236_v53  ;;  %v1531_v3 = vpop.f32.mrf.mxu3 }
 0x54c   :  { %v1537_v11 = vadd.f32 %v1531_v3, %v1312_v22  ;;  %v3289_v41 = vadd.f32 1.0, %v2238_v35  ;;  %v1536_v22 = vadd.f32 %v1511_v1, %v3282_v25 }
 0x54d   :  { %2243 = vrcp.f32 %v1541_v58  ;;  %vm1547_vm14 = vweird.f32 %v1541_v58 }
 0x54e   :  { %v2240_v23 = vpop.eup %2239  ;;  %v2151_v60 = vmul.f32 -1.442695, %v1537_v11 }
 0x54f   :  { %v2242_v54 = vpop.eup %2241  ;;  %v1419_v4 = vadd.f32 1.0, %v2240_v23 }
 0x550   :  { %v1421_v28 = vmul.f32 %v2242_v54, %v1418_v13  ;;  %2245 = vpow2.f32 %v2151_v60  ;;  %vm1426_vm12 = vweird.f32 %v2242_v54 }
 0x551   :  { %2247 = vrcp.f32 %v1419_v4  ;;  %vm3298_vm0 = vmor %vm1425_vm13, %vm1426_vm12  ;;  %v1446_v1 = vand.u32 2147483648, %v1419_v4  ;;  %vm1440_vm4 = vweird.f32 %v1419_v4  ;;  %vm1566_vm13 = vweird.f32 %v3289_v41 }
 0x552   :  { %v1422_v15 = vsub.f32 1.0, %v1421_v28  ;;  %2249 = vrcp.f32 %v3289_v41  ;;  %v1431_v28 = vand.u32 2147483648, %v1418_v13 }
 0x553   :  { %v2244_v57 = vpop.eup %2243 }
 0x554   :  { %v1423_v7 = vmul.f32 %v2242_v54, %v1422_v15  ;;  %v1543_v34 = vmul.f32 %v2244_v57, %v1541_v58  ;;  %v1429_v15 = vand.u32 2147483647, %v1418_v13  ;;  %vm1548_vm15 = vweird.f32 %v2244_v57 }
 0x555   :  { %v1444_v13 = vand.u32 2147483647, %v1419_v4  ;;  %vm3306_vm3 = vmor %vm1547_vm14, %vm1548_vm15 }
 0x556   :  { %v2246_v40 = vpop.eup %2245  ;;  %v1544_v26 = vsub.f32 1.0, %v1543_v34  ;;  %v1424_v60 = vadd.f32 %v2242_v54, %v1423_v7  ;;  %vm1430_vm5 = vcmp.eq.f32.partialorder %v1429_v15, 8.507059e+37 }
 0x557   :  { %v2248_v3 = vpop.eup %2247  ;;  %v3293_v35 = vadd.f32 1.0, %v2246_v40  ;;  %v1551_v40 = vand.u32 2147483647, %v1541_v58  ;;  %vm1445_vm8 = vcmp.eq.f32.partialorder %v1444_v13, 8.507059e+37 }
 0x558   :  { %v3295_v53 = vpop.eup %2249  ;;  %v1436_v11 = vmul.f32 %v2248_v3, %v1419_v4  ;;  %v1545_v23 = vmul.f32 %v2244_v57, %v1544_v26  ;;  %v1553_v26 = vand.u32 2147483648, %v1541_v58  ;;  %vm1441_vm2 = vweird.f32 %v2248_v3 }
 0x559   :  { %2251 = vrcp.f32 %v3293_v35  ;;  %v1562_v25 = vmul.f32 %v3295_v53, %v3289_v41  ;;  %v1428_v30 = vsel %vm3298_vm0, %v2242_v54, %v1424_v60  ;;  %vm1442_vm6 = vmor %vm1440_vm4, %vm1441_vm2  ;;  %vm1552_vm7 = vcmp.eq.f32.partialorder %v1551_v40, 8.507059e+37 }
 0x55a   :  { %v1437_v5 = vsub.f32 1.0, %v1436_v11  ;;  %v1546_v33 = vadd.f32 %v2244_v57, %v1545_v23  ;;  %v1432_v11 = vor.u32 1.1754944e-38, %v1431_v28  ;;  %2253 = vtanh.f32 %v1536_v22 }
 0x55b   :  { %v1563_v58 = vsub.f32 1.0, %v1562_v25  ;;  %v1554_v20 = vor.u32 1.1754944e-38, %v1553_v26  ;;  %v1592_v25 = vand.u32 2147483648, %v3293_v35  ;;  %v1590_v40 = vand.u32 2147483647, %v3293_v35 }
 0x55c   :  { %v1438_v7 = vmul.f32 %v2248_v3, %v1437_v5  ;;  %v1550_v24 = vsel %vm3306_vm3, %v2244_v57, %v1546_v33  ;;  %v1447_v5 = vor.u32 1.1754944e-38, %v1446_v1  ;;  %v1433_v34 = vsel %vm1430_vm5, %v1432_v11, %v1428_v30 }
 0x55d   :  { %v1555_v28 = vsel %vm1552_vm7, %v1554_v20, %v1550_v24  ;;  %v1450_v4 = vmul.f32 %v1433_v34, %v3285_v27  ;;  %v1564_v15 = vmul.f32 %v3295_v53, %v1563_v58  ;;  %vm1586_vm10 = vweird.f32 %v3293_v35 }
 0x55e   :  { %v1439_v49 = vadd.f32 %v2248_v3, %v1438_v7  ;;  %vm1567_vm11 = vweird.f32 %v3295_v53  ;;  %v1572_v27 = vand.u32 2147483648, %v3289_v41  ;;  %vm1591_vm14 = vcmp.eq.f32.partialorder %v1590_v40, 8.507059e+37 }
 0x55f   :  { %v2252_v10 = vpop.eup %2251  ;;  %vm1568_vm15 = vmor %vm1566_vm13, %vm1567_vm11 }
 0x560   :  { %v1582_v54 = vmul.f32 %v2252_v10, %v3293_v35  ;;  %v1443_v60 = vsel %vm1442_vm6, %v2248_v3, %v1439_v49  ;;  %v2254_v57 = vpop.eup %2253  ;;  %vm1587_vm9 = vweird.f32 %v2252_v10  ;;  %v2136_v49 = vld [vmem:[%s3445_s5 + $0x10] sm:$0xff]  ;;  %v1593_v3 = vor.u32 1.1754944e-38, %v1592_v25  ;;  %v3696_v25 = vld [vmem:[#allocation36_spill] sm:$0xff] }
 0x561   :  { %v1448_v31 = vsel %vm1445_vm8, %v1447_v5, %v1443_v60  ;;  %v1596_v1 = vmul.f32 %v2254_v57, %v1555_v28  ;;  %vm1588_vm12 = vmor %vm1586_vm10, %vm1587_vm9  ;;  %v1570_v35 = vand.u32 2147483647, %v3289_v41  ;;  %v1573_v11 = vor.u32 1.1754944e-38, %v1572_v27  ;;  %v3689_v41 = vld [vmem:[#allocation30_spill] sm:$0xff] }
 0x562   :  { %v1583_v22 = vsub.f32 1.0, %v1582_v54  ;;  %v1451_v33 = vmul.f32 %v1448_v31, %v3287_v51  ;;  %v1565_v31 = vadd.f32 %v3295_v53, %v1564_v15  ;;  %v2358_v28 = vld [vmem:[#allocation5 + $0x18] sm:$0xff]  ;;  %v3695_v15 = vld [vmem:[#allocation24_spill] sm:$0xff] }
 0x563   :  { %vm1571_vm0 = vcmp.eq.f32.partialorder %v1570_v35, 8.507059e+37  ;;  %v3694_v57 = vld [vmem:[#allocation34_spill] sm:$0xff] }
 0x564   :  { %v1584_v26 = vmul.f32 %v2252_v10, %v1583_v22  ;;  %v1452_v30 = vadd.f32 %v1451_v33, %v1450_v4  ;;  %v1569_v13 = vsel %vm1568_vm15, %v3295_v53, %v1565_v31  ;;  %v3690_v53 = vld [vmem:[#allocation20_spill] sm:$0xff]  ;;  %v3692_v4 = vld [vmem:[#allocation21_spill] sm:$0xff]  ;;  %v3693_v33 = vld [vmem:[#allocation22_spill] sm:$0xff] }
 0x565   :  { %v1574_v58 = vsel %vm1571_vm0, %v1573_v11, %v1569_v13  ;;  %v3691_v22 = vld [vmem:[#allocation32_spill] sm:$0xff] }
 0x566   :  { %v1597_v20 = vadd.f32 %v1596_v1, %v1452_v30  ;;  %v1585_v24 = vadd.f32 %v2252_v10, %v1584_v26  ;;  %v3697_v1 = vld [vmem:[#allocation25_spill] sm:$0xff]  ;;  %v2359_v26 = vld [vmem:[#allocation5 + $0x20] sm:$0xff] }
 0x567   :  { %v2360_v30 = vld [vmem:[#allocation5] sm:$0xff] }
 0x568   :  { %2255 = vtanh.f32 %v1597_v20  ;;  %1642 = vmatpush.msrb.mxu1 %v1597_v20  ;;  %v1589_v51 = vsel %vm1588_vm12, %v2252_v10, %v1585_v24 }
 0x569   :  { %2153 = vmatmul.msk.f32.vlgmr.msrb.gmra.mxu1 %vm348_vm1, %v2136_v49  ;;  %v1594_v7 = vsel %vm1591_vm14, %v1593_v3, %v1589_v51 }
 0x56a   :  { %1714 = vmatpush.msra.mxu1 %v2554_v56  ;;  %v1601_v23 = vsub.f32 1.0, %v1594_v7  ;;  %v2154_v56 = vld [vmem:[%s3443_s3 + $0x18] sm:$0xff] }
 0x56b   :  { %2158 = vmatmul.msk.f32.vlgmr.msra.gmra.mxu2 %vm348_vm1, %v2154_v56 }
 0x56c   :  { %1774 = vmatpush.msrb.mxu1 %v2677_v38  ;;  %v1602_v54 = vmul.f32 %v1601_v23, %v3280_v9  ;;  %v2155_v38 = vld [vmem:[%s3444_s4 + $0x30] sm:$0xff]  ;;  %v2357_v9 = vld [vmem:[#allocation5 + $0x38] sm:$0xff] }
 0x56e   :  { %v2256_v10 = vpop.eup %2255 }
 0x56f   :  { %v1599_v5 = vmul.f32 %v2256_v10, %v1574_v58 }
 0x571   :  { %v1600_v34 = vmul.f32 %v1599_v5, %v1594_v7  ;;  %2160 = vmatmul.msk.f32.vlgmr.msra.gmra.mxu1 %vm348_vm1, %v2154_v56 }
 0x572   :  { %1831 = vmatpush.msra.mxu1 %v3094_v2  ;;  %v2344_v2 = vld [vmem:[#allocation5 + $0x1d8] sm:$0xff] }
 0x573   :  { %v1603_v60 = vadd.f32 %v1602_v54, %v1600_v34  ;;  %2161 = vmatmul.msk.f32.vlgmr.msrb.gmra.mxu2 %vm348_vm1, %v2154_v56 }
 0x574   :  { %1832 = vmatpush.msra.mxu1 %v3097_v29  ;;  %v2345_v29 = vld [vmem:[#allocation5 + $0x1b8] sm:$0xff] }
 0x575   :  { %1622 = vmatpush.msrb.mxu0 %v1603_v60 }
 0x576   :  { %2152 = vmatmul.msk.f32.vlgmr.msrb.gmra.mxu0 %vm348_vm1, %v2136_v49  ;;  %1833 = vmatpush.msra.mxu1 %v3101_v6  ;;  %v2346_v6 = vld [vmem:[#allocation5 + $0x198] sm:$0xff] }
 0x577   :  { %1694 = vmatpush.msra.mxu0 %v2567_v63 }
 0x578   :  { %1834 = vmatpush.msra.mxu1 %v3106_v0  ;;  %v2347_v0 = vld [vmem:[#allocation5 + $0x178] sm:$0xff] }
 0x579   :  { %1754 = vmatpush.msrb.mxu0 %v2675_v37  ;;  %2163 = vmatmul.msk.f32.vlgmr.msrb.gmra.mxu1 %vm348_vm1, %v2154_v56 }
 0x57a   :  { %1835 = vmatpush.msra.mxu1 %v3111_v32  ;;  %v2156_v32 = vld [vmem:[%s3444_s4 + $0x38] sm:$0xff] }
 0x57c   :  { %1836 = vmatpush.msra.mxu1 %v3114_v45 }
 0x57e   :  { %2159 = vmatmul.msk.f32.vlgmr.msra.gmra.mxu0 %vm348_vm1, %v2154_v56  ;;  %1837 = vmatpush.msra.mxu1 %v3119_v48  ;;  %v2348_v48 = vld [vmem:[#allocation5 + $0x158] sm:$0xff] }
 0x580   :  { %1838 = vmatpush.msra.mxu1 %v3122_v39 }
 0x582   :  { %1839 = vmatpush.msra.mxu1 %v3125_v50  ;;  %v2349_v50 = vld [vmem:[#allocation5 + $0x138] sm:$0xff] }
 0x584   :  { %1840 = vmatpush.msra.mxu1 %v3128_v44  ;;  %v2350_v44 = vld [vmem:[#allocation5 + $0x118] sm:$0xff] }
 0x586   :  { %2162 = vmatmul.msk.f32.vlgmr.msrb.gmra.mxu0 %vm348_vm1, %v2154_v56  ;;  %1841 = vmatpush.msra.mxu1 %v3133_v43  ;;  %v2351_v43 = vld [vmem:[#allocation5 + $0xf8] sm:$0xff] }
 0x588   :  { %1842 = vmatpush.msra.mxu1 %v3136_v47  ;;  %v3677_v47 = vld [vmem:[#allocation63_spill] sm:$0xff] }
 0x58a   :  { %1843 = vmatpush.msra.mxu1 %v3139_v59  ;;  %v3678_v59 = vld [vmem:[#allocation60_spill] sm:$0xff] }
 0x58c   :  { %1844 = vmatpush.msra.mxu1 %v3142_v36  ;;  %v2352_v36 = vld [vmem:[#allocation5 + $0xd8] sm:$0xff] }
 0x58e   :  { %1845 = vmatpush.msra.mxu1 %v3145_v42  ;;  %v3679_v42 = vld [vmem:[#allocation65_spill] sm:$0xff] }
 0x590   :  { %1846 = vmatpush.msra.mxu1 %v3148_v46  ;;  %v3680_v46 = vld [vmem:[#allocation64_spill] sm:$0xff] }
 0x592   :  { %1958 = vmatpush.msrb.mxu1 %v3151_v62  ;;  %v2353_v62 = vld [vmem:[#allocation5 + $0xb8] sm:$0xff] }
 0x594   :  { %1959 = vmatpush.msrb.mxu1 %v2344_v2 }
 0x596   :  { %1960 = vmatpush.msrb.mxu1 %v2345_v29 }
 0x598   :  { %1961 = vmatpush.msrb.mxu1 %v2346_v6 }
 0x59a   :  { %1962 = vmatpush.msrb.mxu1 %v2347_v0 }
 0x59c   :  { %1963 = vmatpush.msrb.mxu1 %v2348_v48 }
 0x59e   :  { %1964 = vmatpush.msrb.mxu1 %v2349_v50 }
 0x5a0   :  { %1965 = vmatpush.msrb.mxu1 %v2350_v44 }
 0x5a2   :  { %1966 = vmatpush.msrb.mxu1 %v2351_v43 }
 0x5a4   :  { %1967 = vmatpush.msrb.mxu1 %v2352_v36 }
 0x5a6   :  { %1968 = vmatpush.msrb.mxu1 %v2353_v62 }
 0x5e6   :  { %v1644_v63 = vpop.f32.mrf.mxu1 }
 0x5e7   :  { %v1648_v37 = vadd.f32 %v1644_v63, %v3170_v52  ;;  %v3681_v52 = vld [vmem:[#allocation13_spill] sm:$0xff] }
 0x5e9   :  { %1823 = vmatpush.msra.mxu0 %v1648_v37 }
 0x5ea   :  { %2166 = vmatmul.msk.f32.vlgmr.msra.gmra.mxu0 %vm348_vm1, %v2155_v38 }
 0x5eb   :  { %1938 = vmatpush.msrb.mxu0 %v3173_v19  ;;  %v3682_v19 = vld [vmem:[#allocation66_spill] sm:$0xff] }
 0x5ed   :  { %1939 = vmatpush.msrb.mxu0 %v3180_v17  ;;  %v2354_v17 = vld [vmem:[#allocation5 + $0x98] sm:$0xff] }
 0x5ee   :  { %1969 = vmatpush.msrb.mxu1 %v2354_v17  ;;  %v3406_v40 = vpop.f32.mrf.mxu2  ;;  %v1716_v27 = vpop.f32.mrf.mxu1 }
 0x5ef   :  { %1940 = vmatpush.msrb.mxu0 %v3183_v21  ;;  %v3683_v21 = vld [vmem:[#allocation15_spill] sm:$0xff] }
 0x5f1   :  { %1941 = vmatpush.msrb.mxu0 %v3186_v55  ;;  %v3684_v55 = vld [vmem:[#allocation14_spill] sm:$0xff] }
 0x5f2   :  { %2167 = vmatmul.msk.f32.gmra.mxu0 %vm348_vm1, %v2156_v32 }
 0x5f3   :  { %1942 = vmatpush.msrb.mxu0 %v3189_v61  ;;  %v1624_v45 = vpop.f32.mrf.mxu0  ;;  %v2355_v61 = vld [vmem:[#allocation5 + $0x78] sm:$0xff] }
 0x5f4   :  { %v3376_v39 = vadd.f32 %v1624_v45, %v3197_v8  ;;  %1970 = vmatpush.msrb.mxu1 %v2355_v61  ;;  %v3685_v8 = vld [vmem:[#allocation17_spill] sm:$0xff] }
 0x5f5   :  { %1943 = vmatpush.msrb.mxu0 %v3199_v12  ;;  %v3686_v12 = vld [vmem:[#allocation16_spill] sm:$0xff] }
 0x5f6   :  { %1800 = vmatpush.msra.mxu2 %v3376_v39  ;;  %v1736_v20 = vpop.f32.mrf.mxu2  ;;  %v1776_v3 = vpop.f32.mrf.mxu1 }
 0x5f7   :  { %1944 = vmatpush.msrb.mxu0 %v3203_v14  ;;  %2164 = vmatmul.msk.f32.vlgmr.msra.gmra.mxu2 %vm348_vm1, %v2155_v38  ;;  %v2356_v14 = vld [vmem:[#allocation5 + $0x58] sm:$0xff] }
 0x5f8   :  { %1898 = vmatpush.msrb.mxu2 %v3210_v18  ;;  %1971 = vmatpush.msrb.mxu1 %v2356_v14  ;;  %v3688_v18 = vld [vmem:[#allocation18_spill] sm:$0xff] }
 0x5f9   :  { %1945 = vmatpush.msrb.mxu0 %v3207_v16  ;;  %v3687_v16 = vld [vmem:[#allocation19_spill] sm:$0xff] }
 0x5fa   :  { %1899 = vmatpush.msrb.mxu2 %v3677_v47  ;;  %1972 = vmatpush.msrb.mxu1 %v2357_v9 }
 0x5fb   :  { %1946 = vmatpush.msrb.mxu0 %v3678_v59  ;;  %v1696_v51 = vpop.f32.mrf.mxu0 }
 0x5fc   :  { %1900 = vmatpush.msrb.mxu2 %v3679_v42  ;;  %1973 = vmatpush.msrb.mxu1 %v2358_v28 }
 0x5fd   :  { %1947 = vmatpush.msrb.mxu0 %v3680_v46 }
 0x5fe   :  { %1901 = vmatpush.msrb.mxu2 %v3681_v52 }
 0x5ff   :  { %1948 = vmatpush.msrb.mxu0 %v3682_v19  ;;  %2165 = vmatmul.msk.f32.gmra.mxu2 %vm348_vm1, %v2156_v32 }
 0x600   :  { %1902 = vmatpush.msrb.mxu2 %v3683_v21 }
 0x601   :  { %1949 = vmatpush.msrb.mxu0 %v3684_v55 }
 0x602   :  { %1903 = vmatpush.msrb.mxu2 %v3685_v8 }
 0x603   :  { %1950 = vmatpush.msrb.mxu0 %v3686_v12  ;;  %v1756_v35 = vpop.f32.mrf.mxu0 }
 0x604   :  { %1904 = vmatpush.msrb.mxu2 %v3687_v16 }
 0x605   :  { %1951 = vmatpush.msrb.mxu0 %v3688_v18 }
 0x606   :  { %1905 = vmatpush.msrb.mxu2 %v3689_v41 }
 0x607   :  { %1952 = vmatpush.msrb.mxu0 %v3690_v53 }
 0x608   :  { %1906 = vmatpush.msrb.mxu2 %v3691_v22 }
 0x609   :  { %1953 = vmatpush.msrb.mxu0 %v3692_v4 }
 0x60a   :  { %1907 = vmatpush.msrb.mxu2 %v3693_v33 }
 0x60c   :  { %1908 = vmatpush.msrb.mxu2 %v3694_v57 }
 0x60e   :  { %1909 = vmatpush.msrb.mxu2 %v3695_v15 }
 0x610   :  { %1910 = vmatpush.msrb.mxu2 %v3696_v25 }
 0x612   :  { %1911 = vmatpush.msrb.mxu2 %v3697_v1 }
 0x614   :  { %1912 = vmatpush.msrb.mxu2 %v2359_v26 }
 0x616   :  { %1913 = vmatpush.msrb.mxu2 %v2360_v30 }
 0x667   :  { %v3408_v58 = vpop.f32.mrf.mxu0 }
 0x66f   :  { %v1828_v45 = vpop.f32.mrf.mxu0 }
 0x67a   :  { %v1802_v49 = vpop.f32.mrf.mxu2 }
 0x67b   :  { %1847 = vmatmul.f32.vlgmr.msra.gmra.mxu1 %v1802_v49 }
 0x682   :  { %v1805_v24 = vpop.f32.mrf.mxu2 }
 0x683   :  { %v1897_v31 = vadd.f32 %v1805_v24, %v1802_v49  ;;  %1850 = vmatmul.f32.gmra.mxu1 %v1805_v24 }
 0x685   :  { %1914 = vmatmul.f32.vlgmr.msrb.gmra.mxu2 %v1897_v31  ;;  %1934 = vmatmul.f32.vlgmr.msra.gmra.mxu3 %v1897_v31 }
 0x686   :  { %1954 = vmatmul.f32.vlgmr.msrb.gmra.mxu0 %v1897_v31 }
 0x68b   :  { %1974 = vmatmul.f32.vlgmr.msrb.gmra.mxu1 %v1897_v31 }
 0x6f8   :  { %v1848_v7 = vpop.f32.mrf.mxu1 }
 0x6f9   :  { %v1854_v13 = vadd.f32 %v1848_v7, %v1776_v3 }
 0x6fb   :  { %v2168_v11 = vmul.f32 -1.442695, %v1854_v13 }
 0x6fd   :  { %2257 = vpow2.f32 %v2168_v11 }
 0x700   :  { %v1851_v23 = vpop.f32.mrf.mxu1 }
 0x701   :  { %v1855_v10 = vadd.f32 %v1851_v23, %v1776_v3 }
 0x703   :  { %v2258_v5 = vpop.eup %2257  ;;  %v2169_v34 = vmul.f32 -1.442695, %v1855_v10  ;;  %v1955_v52 = vpop.f32.mrf.mxu0 }
 0x704   :  { %v1862_v54 = vadd.f32 1.0, %v2258_v5  ;;  %v1980_v8 = vadd.f32 %v1955_v52, %v1736_v20  ;;  %v2157_v52 = vld [vmem:[%s3445_s5 + $0x18] sm:$0xff] }
 0x705   :  { %2259 = vpow2.f32 %v2169_v34 }
 0x706   :  { %2261 = vrcp.f32 %v1862_v54  ;;  %v1873_v12 = vand.u32 2147483647, %v1862_v54  ;;  %v1875_v53 = vand.u32 2147483648, %v1862_v54  ;;  %vm1869_vm6 = vweird.f32 %v1862_v54 }
 0x708   :  { %v1915_v60 = vpop.f32.mrf.mxu2  ;;  %v1935_v56 = vpop.f32.mrf.mxu3  ;;  %vm1874_vm8 = vcmp.eq.f32.partialorder %v1873_v12, 8.507059e+37  ;;  %v1876_v26 = vor.u32 1.1754944e-38, %v1875_v53 }
 0x709   :  { %v1978_v63 = vadd.f32 %v1915_v60, %v1696_v51  ;;  %v1979_v37 = vadd.f32 %v1935_v56, %v1716_v27  ;;  %v1975_v38 = vpop.f32.mrf.mxu1 }
 0x70a   :  { %v1981_v2 = vadd.f32 %v1975_v38, %v1756_v35 }
 0x70b   :  { %v2260_v29 = vpop.eup %2259  ;;  %v2170_v6 = vmul.f32 -1.442695, %v1978_v63  ;;  %v2171_v0 = vmul.f32 -1.442695, %v1979_v37 }
 0x70c   :  { %v2262_v32 = vpop.eup %2261  ;;  %v1863_v48 = vadd.f32 1.0, %v2260_v29  ;;  %v2172_v50 = vmul.f32 -1.442695, %v1981_v2 }
 0x70d   :  { %2263 = vpow2.f32 %v2170_v6  ;;  %v1865_v44 = vmul.f32 %v2262_v32, %v1862_v54  ;;  %vm1870_vm3 = vweird.f32 %v2262_v32 }
 0x70e   :  { %2265 = vrcp.f32 %v1863_v48  ;;  %v1890_v14 = vand.u32 2147483648, %v1863_v48  ;;  %vm1884_vm4 = vweird.f32 %v1863_v48  ;;  %v1888_v9 = vand.u32 2147483647, %v1863_v48  ;;  %vm3416_vm7 = vmor %vm1869_vm6, %vm1870_vm3 }
 0x70f   :  { %2267 = vpow2.f32 %v2171_v0  ;;  %v1866_v47 = vsub.f32 1.0, %v1865_v44 }
 0x710   :  { %2269 = vpow2.f32 %v2172_v50  ;;  %v1891_v33 = vor.u32 1.1754944e-38, %v1890_v14  ;;  %vm1889_vm9 = vcmp.eq.f32.partialorder %v1888_v9, 8.507059e+37 }
 0x711   :  { %v1867_v19 = vmul.f32 %v2262_v32, %v1866_v47 }
 0x713   :  { %v2264_v43 = vpop.eup %2263  ;;  %v1868_v16 = vadd.f32 %v2262_v32, %v1867_v19 }
 0x714   :  { %v2266_v59 = vpop.eup %2265  ;;  %v1985_v36 = vadd.f32 1.0, %v2264_v43 }
 0x715   :  { %v2268_v42 = vpop.eup %2267  ;;  %v1880_v46 = vmul.f32 %v2266_v59, %v1863_v48  ;;  %vm1885_vm2 = vweird.f32 %v2266_v59  ;;  %v1872_v15 = vsel %vm3416_vm7, %v2262_v32, %v1868_v16 }
 0x716   :  { %v2270_v62 = vpop.eup %2269  ;;  %2271 = vrcp.f32 %v1985_v36  ;;  %v3410_v21 = vadd.f32 1.0, %v2268_v42  ;;  %vm1886_vm5 = vmor %vm1884_vm4, %vm1885_vm2  ;;  %v1997_v20 = vand.u32 2147483648, %v1985_v36  ;;  %v1995_v31 = vand.u32 2147483647, %v1985_v36 }
 0x717   :  { %v1881_v17 = vsub.f32 1.0, %v1880_v46  ;;  %v3412_v55 = vadd.f32 1.0, %v2270_v62  ;;  %v1877_v51 = vsel %vm1874_vm8, %v1876_v26, %v1872_v15  ;;  %vm1991_vm11 = vweird.f32 %v1985_v36 }
 0x718   :  { %2273 = vrcp.f32 %v3410_v21  ;;  %v1998_v23 = vor.u32 1.1754944e-38, %v1997_v20  ;;  %v1894_v10 = vmul.f32 %v1877_v51, %v3408_v58  ;;  %vm1996_vm13 = vcmp.eq.f32.partialorder %v1995_v31, 8.507059e+37 }
 0x719   :  { %v1882_v61 = vmul.f32 %v2266_v59, %v1881_v17  ;;  %2275 = vrcp.f32 %v3412_v55  ;;  %v2036_v38 = vand.u32 2147483648, %v3412_v55  ;;  %vm2030_vm15 = vweird.f32 %v3412_v55 }
 0x71a   :  { %2277 = vtanh.f32 %v1980_v8  ;;  %v2034_v2 = vand.u32 2147483647, %v3412_v55  ;;  %v2016_v0 = vand.u32 2147483648, %v3410_v21  ;;  %vm2010_vm3 = vweird.f32 %v3410_v21 }
 0x71b   :  { %v1883_v18 = vadd.f32 %v2266_v59, %v1882_v61  ;;  %v2037_v32 = vor.u32 1.1754944e-38, %v2036_v38 }
 0x71c   :  { %v2272_v41 = vpop.eup %2271  ;;  %vm2035_vm4 = vcmp.eq.f32.partialorder %v2034_v2, 8.507059e+37  ;;  %v2017_v44 = vor.u32 1.1754944e-38, %v2016_v0 }
 0x71d   :  { %v1887_v28 = vsel %vm1886_vm5, %v2266_v59, %v1883_v18  ;;  %v1987_v22 = vmul.f32 %v2272_v41, %v1985_v36  ;;  %vm1992_vm10 = vweird.f32 %v2272_v41 }
 0x71e   :  { %v2274_v57 = vpop.eup %2273  ;;  %v1892_v30 = vsel %vm1889_vm9, %v1891_v33, %v1887_v28  ;;  %vm1993_vm12 = vmor %vm1991_vm11, %vm1992_vm10 }
 0x71f   :  { %v1988_v25 = vsub.f32 1.0, %v1987_v22  ;;  %v2276_v1 = vpop.eup %2275  ;;  %v2006_v49 = vmul.f32 %v2274_v57, %v3410_v21  ;;  %v1895_v35 = vmul.f32 %v1892_v30, %v1828_v45  ;;  %vm2011_vm2 = vweird.f32 %v2274_v57 }
 0x720   :  { %v2026_v27 = vmul.f32 %v2276_v1, %v3412_v55  ;;  %v2278_v11 = vpop.eup %2277  ;;  %vm2031_vm14 = vweird.f32 %v2276_v1  ;;  %v2014_v45 = vand.u32 2147483647, %v3410_v21  ;;  %vm2012_vm5 = vmor %vm2010_vm3, %vm2011_vm2 }
 0x721   :  { %v1989_v24 = vmul.f32 %v2272_v41, %v1988_v25  ;;  %v2007_v3 = vsub.f32 1.0, %v2006_v49  ;;  %v1896_v63 = vadd.f32 %v1895_v35, %v1894_v10  ;;  %vm2032_vm0 = vmor %vm2030_vm15, %vm2031_vm14 }
 0x722   :  { %v2027_v13 = vsub.f32 1.0, %v2026_v27  ;;  %vm2015_vm6 = vcmp.eq.f32.partialorder %v2014_v45, 8.507059e+37 }
 0x723   :  { %v1990_v7 = vadd.f32 %v2272_v41, %v1989_v24  ;;  %v2008_v60 = vmul.f32 %v2274_v57, %v2007_v3 }
 0x724   :  { %v2028_v34 = vmul.f32 %v2276_v1, %v2027_v13 }
 0x725   :  { %v1994_v5 = vsel %vm1993_vm12, %v2272_v41, %v1990_v7  ;;  %v2009_v6 = vadd.f32 %v2274_v57, %v2008_v60 }
 0x726   :  { %v1999_v54 = vsel %vm1996_vm13, %v1998_v23, %v1994_v5  ;;  %v2029_v37 = vadd.f32 %v2276_v1, %v2028_v34 }
 0x727   :  { %v2040_v56 = vmul.f32 %v2278_v11, %v1999_v54  ;;  %v2013_v50 = vsel %vm2012_vm5, %v2274_v57, %v2009_v6 }
 0x728   :  { %v2033_v58 = vsel %vm2032_vm0, %v2276_v1, %v2029_v37  ;;  %v2018_v59 = vsel %vm2015_vm6, %v2017_v44, %v2013_v50 }
 0x729   :  { %v2041_v29 = vadd.f32 %v2040_v56, %v1896_v63  ;;  %v2038_v48 = vsel %vm2035_vm4, %v2037_v32, %v2033_v58 }
 0x72a   :  { %v2045_v43 = vsub.f32 1.0, %v2038_v48 }
 0x72b   :  { %2279 = vtanh.f32 %v2041_v29 }
 0x72c   :  { %v2046_v46 = vmul.f32 %v2045_v43, %v3406_v40 }
 0x731   :  { %v2280_v47 = vpop.eup %2279 }
 0x732   :  { %v2043_v36 = vmul.f32 %v2280_v47, %v2018_v59 }
 0x734   :  { %v2044_v42 = vmul.f32 %v2043_v36, %v2038_v48 }
 0x736   :  { %v2047_v62 = vadd.f32 %v2046_v46, %v2044_v42 }
 0x738   :  { %2066 = vmatpush.msra.mxu2 %v2047_v62 }
 0x739   :  { %2173 = vmatmul.msk.f32.vlgmr.msra.gmra.mxu2 %vm348_vm1, %v2157_v52 }
 0x7bc   :  { %v2068_v19 = vpop.f32.mrf.mxu2 }
 0x7bd   :  { %v2071_v17 = vadd.f32 %v2068_v19, %v3376_v39 }
 0x7bf   :  { %2072 = vst [vmem:[#allocation8] sm:$0xff] %v2071_v17 }
 0x7c0   :  { %2083 = dma.vmem_to_hbm [thread:$0]  %s2079_s29, 128, %s2081_s10, [#allocation4]  }
 0x7c1   :  { %2461 = dma.done.wait [#allocation4], 128  }
 0x7c2   :  { %2462 = vsyncadd [#allocation4], 4294967168 }
 0x7c3   :  { %2088 = vsyncpa [#allocation3], 1 }
 0x7c4   :  { %2089 = vsyncpa [#allocation6], 1 }
 0x7c5   :  { %2090 = vsyncpa [#allocation4], 1 }

</bundles_post_ra>
